<compile_context>
chip_gen: v6e
topology: v6e:2x2x1
jax: 0.10.0
libtpu: 0.0.40
codegen_flags: <defaults>
</compile_context>

<pallas_src>
import functools

import jax
import jax.numpy as jnp
from jax import lax
from jax.experimental import pallas as pl
from jax.experimental.pallas import tpu as pltpu


def _round_up(x: int, m: int) -> int:
    return ((x + m - 1) // m) * m


def _merge_topk(dist, col, o_ref, best_d_ref, *, k: int):
    """Merge this tile's distances into the running top-k carry.

    dist: (TM, TN) f32 distances (padded columns already set to +inf).
    col:  (1, TN)  int32 global column indices of this tile.
    o_ref / best_d_ref: (TM, KP) running best indices / distances (carry).
    Candidate indices are globally unique across {carry, tile}, so knocking
    out by index removes exactly the chosen entry.  Ties break by smaller
    index.  Winners are written in ascending-distance order (lane t = t-th).
    """
    tm = dist.shape[0]
    k_pad = o_ref.shape[1]

    carry_d = best_d_ref[...]
    carry_i = o_ref[...]

    big = jnp.int32(2 ** 30)
    lane = lax.broadcasted_iota(jnp.int32, (tm, k_pad), 1)
    new_d = jnp.full((tm, k_pad), jnp.inf, jnp.float32)
    new_i = jnp.zeros((tm, k_pad), jnp.int32)

    for t in range(k):
        tile_min = jnp.min(dist, axis=1, keepdims=True)            # (TM, 1)
        carry_min = jnp.min(carry_d, axis=1, keepdims=True)        # (TM, 1)
        win_d = jnp.minimum(tile_min, carry_min)                   # (TM, 1)

        # Index of the winner in whichever set achieved win_d (ties -> min idx).
        tile_sel = jnp.min(jnp.where(dist == win_d, col, big),
                           axis=1, keepdims=True)                  # (TM, 1)
        carry_sel = jnp.min(jnp.where(carry_d == win_d, carry_i, big),
                            axis=1, keepdims=True)                 # (TM, 1)
        sel = jnp.minimum(tile_sel, carry_sel)                     # (TM, 1)

        new_d = jnp.where(lane == t, win_d, new_d)
        new_i = jnp.where(lane == t, sel, new_i)

        # Knock the winner out of the set it came from (index is unique).
        dist = jnp.where(col == sel, jnp.inf, dist)
        carry_d = jnp.where(carry_i == sel, jnp.inf, carry_d)

    best_d_ref[...] = new_d
    o_ref[...] = new_i


def _knn_kernel_vpu(q_ref, pt_ref, o_ref, best_d_ref, *, k: int, n_points: int):
    """Tiny-D path: exact squared distances, unrolled over features on the VPU."""
    j = pl.program_id(1)
    tm, d_feat = q_ref.shape
    tn = pt_ref.shape[1]
    k_pad = o_ref.shape[1]

    @pl.when(j == 0)
    def _init():
        best_d_ref[...] = jnp.full((tm, k_pad), jnp.inf, jnp.float32)
        o_ref[...] = jnp.zeros((tm, k_pad), jnp.int32)

    # Global point indices of this tile's columns, kept at (1, TN).
    col = j * tn + lax.broadcasted_iota(jnp.int32, (1, tn), 1)

    q = q_ref[...]
    p = pt_ref[...]
    dist = jnp.zeros((tm, tn), jnp.float32)
    for dd in range(d_feat):
        diff = q[:, dd:dd + 1] - p[dd:dd + 1, :]                   # (TM, TN)
        dist = dist + diff * diff

    dist = jnp.where(col < n_points, dist, jnp.inf)
    _merge_topk(dist, col, o_ref, best_d_ref, k=k)


def _knn_kernel_mxu(q_ref, pt_ref, pp_ref, o_ref, best_d_ref, *,
                    k: int, n_points: int):
    """Large-D path: ||p||^2 - 2 q.p (the ||q||^2 term is a per-row constant and
    cannot change the ordering, so it is dropped entirely)."""
    j = pl.program_id(1)
    tm = q_ref.shape[0]
    tn = pt_ref.shape[1]
    k_pad = o_ref.shape[1]

    @pl.when(j == 0)
    def _init():
        best_d_ref[...] = jnp.full((tm, k_pad), jnp.inf, jnp.float32)
        o_ref[...] = jnp.zeros((tm, k_pad), jnp.int32)

    col = j * tn + lax.broadcasted_iota(jnp.int32, (1, tn), 1)

    cross = jnp.dot(q_ref[...], pt_ref[...],
                    preferred_element_type=jnp.float32)            # (TM, TN)
    dist = pp_ref[...] - 2.0 * cross                               # + const/row
    dist = jnp.where(col < n_points, dist, jnp.inf)
    _merge_topk(dist, col, o_ref, best_d_ref, k=k)


def knn_pallas(barycenters: jax.Array, k: int, batch_size: int,
               *, use_bf16_cross: bool = False) -> jax.Array:
    """Returns (N, k) float32 array of neighbor indices (PyTorch-compatible)."""
    del batch_size  # chunking in the reference does not change the result
    n, d = barycenters.shape
    assert 1 <= k <= n, "k must be in [1, n]"
    # TODO(synk): float32 index output (as in the PyTorch module) is only exact
    # for n < 2**24 points.
    x = barycenters.astype(jnp.float32)

    # VPU (unrolled diff^2) wins for small feature dims; MXU path for large D.
    use_mxu = d > 32

    if use_mxu:
        d_pad = _round_up(d, 8)
        tm = 256
        # Keep the double-buffered (d_pad, TN) point tiles within ~24 MiB.
        tn = _round_up(max(256, min(2048, (24 * 1024 * 1024) // (8 * d_pad))), 128)
    else:
        d_pad = d           # no 128x padding for tiny D
        tm = 128
        tn = 4096           # safe on v5e/v6e/v7x with the explicit vmem limit

    tm = min(tm, _round_up(n, 8))
    tn = min(tn, _round_up(n, 128))
    # Guarantee >= 2 query tiles when possible so both TensorCores get work.
    if _round_up(n, tm) // tm < 2:
        tm = max(8, min(tm, _round_up((n + 1) // 2, 8)))
    n_pad_q = _round_up(n, tm)
    n_pad_p = _round_up(n, tn)
    k_pad = max(128, _round_up(k, 128))
    assert k <= tn, "k must not exceed the point-tile width"

    queries = jnp.zeros((n_pad_q, d_pad), jnp.float32).at[:n, :d].set(x)
    points_t = jnp.zeros((d_pad, n_pad_p), jnp.float32).at[:d, :n].set(x.T)

    grid = (n_pad_q // tm, n_pad_p // tn)
    out_spec = pl.BlockSpec((tm, k_pad), lambda i, j: (i, 0))
    scratch = [pltpu.VMEM((tm, k_pad), jnp.float32)]
    cparams = pltpu.CompilerParams(
        dimension_semantics=("parallel", "arbitrary"),
        vmem_limit_bytes=48 * 1024 * 1024)

    if use_mxu:
        sq = jnp.sum(x * x, axis=1)
        pp = jnp.zeros((1, n_pad_p), jnp.float32).at[0, :n].set(sq)
        if use_bf16_cross:  # faster cross term on v6e/v7x; may reorder near-ties
            queries = queries.astype(jnp.bfloat16)
            points_t = points_t.astype(jnp.bfloat16)
        kernel = functools.partial(_knn_kernel_mxu, k=k, n_points=n)
        in_specs = [
            pl.BlockSpec((tm, d_pad), lambda i, j: (i, 0)),   # query tile
            pl.BlockSpec((d_pad, tn), lambda i, j: (0, j)),   # point tile (D-major)
            pl.BlockSpec((1, tn), lambda i, j: (0, j)),       # point norms
        ]
        args = (queries, points_t, pp)
    else:
        kernel = functools.partial(_knn_kernel_vpu, k=k, n_points=n)
        in_specs = [
            pl.BlockSpec((tm, d_pad), lambda i, j: (i, 0)),   # query tile
            pl.BlockSpec((d_pad, tn), lambda i, j: (0, j)),   # point tile (D-major)
        ]
        args = (queries, points_t)

    out = pl.pallas_call(
        kernel,
        out_shape=jax.ShapeDtypeStruct((n_pad_q, k_pad), jnp.int32),
        grid_spec=pltpu.PrefetchScalarGridSpec(
            num_scalar_prefetch=0,
            grid=grid,
            in_specs=in_specs,
            out_specs=out_spec,
            scratch_shapes=scratch),
        compiler_params=cparams,
    )(*args)

    # Match the PyTorch module: float32 tensor of indices.
    return out[:n, :k].astype(jnp.float32)


def _knn_ref(barycenters, k):
    x = barycenters.astype(jnp.float32)
    d2 = jnp.sum((x[:, None, :] - x[None, :, :]) ** 2, axis=-1)
    _, idx = lax.top_k(-d2, k)
    return idx.astype(jnp.float32)


if __name__ == "__main__":
    key = jax.random.PRNGKey(0)

    # Main check: tiny feature dim (VPU path), shapes implied by the module.
    N, D = 64, 3
    k, batch_size = 4, 16
    barycenters = jax.random.normal(key, (N, D), dtype=jnp.float32)

    out = knn_pallas(barycenters, k=k, batch_size=batch_size)
    out = jax.block_until_ready(out)

    assert out.shape == (N, k) and out.dtype == jnp.float32
    ref = _knn_ref(barycenters, k)
    ok = bool(jnp.all(jnp.sort(out, axis=1) == jnp.sort(ref, axis=1)))
    assert ok, "mismatch vs reference (VPU path)"

    # Secondary check: large feature dim exercises the MXU path.
    key2 = jax.random.PRNGKey(0)
    N2, D2, k2 = 96, 40, 5
    bary2 = jax.random.normal(key2, (N2, D2), dtype=jnp.float32)
    out2 = jax.block_until_ready(knn_pallas(bary2, k=k2, batch_size=32))
    ref2 = _knn_ref(bary2, k2)
    assert out2.shape == (N2, k2) and out2.dtype == jnp.float32
    ok2 = bool(jnp.all(jnp.sort(out2, axis=1) == jnp.sort(ref2, axis=1)))
    assert ok2, "mismatch vs reference (MXU path)"

    print("KERNEL_OK")
</pallas_src>

<mosaic_0001>
module attributes {stable_mosaic.version = 11 : i64} {
  func.func @_knn_kernel_vpu(%arg0: i32, %arg1: i32, %arg2: memref<32x3xf32, #tpu.memory_space<vmem>>, %arg3: memref<3x128xf32, #tpu.memory_space<vmem>>, %arg4: memref<32x128xi32, #tpu.memory_space<vmem>>, %arg5: memref<32x128xf32, #tpu.memory_space<vmem>>) attributes {dimension_semantics = [#tpu.dimension_semantics<parallel>, #tpu.dimension_semantics<arbitrary>], iteration_bounds = array<i64: 2, 1>, scalar_prefetch = 0 : i64, scratch_operands = 1 : i64, tpu.core_type = #tpu.core_type<tc>, window_params = [{transform_indices = @transform_0, window_bounds = array<i64: 32, 3>}, {transform_indices = @transform_1, window_bounds = array<i64: 3, 128>}, {transform_indices = @transform_2, window_bounds = array<i64: 32, 128>}]} {
    %c0_i32 = arith.constant 0 : i32
    %0 = arith.cmpi eq, %arg1, %c0_i32 : i32
    %1 = arith.extui %0 : i1 to i32
    %c0_i32_0 = arith.constant 0 : i32
    %2 = arith.cmpi ne, %1, %c0_i32_0 : i32
    scf.if %2 {
      %cst_49 = arith.constant 0x7F800000 : f32
      %191 = vector.broadcast %cst_49 : f32 to vector<32x128xf32>
      %c0_50 = arith.constant 0 : index
      %c0_51 = arith.constant 0 : index
      %192 = vector.load %arg5[%c0_50, %c0_51] : memref<32x128xf32, #tpu.memory_space<vmem>>, vector<32x128xf32>
      tpu.vector_store %arg5[%c0_50, %c0_51], %191 {strides = array<i32>} : memref<32x128xf32, #tpu.memory_space<vmem>>, vector<32x128xf32>,
      %c0_i32_52 = arith.constant 0 : i32
      %193 = vector.broadcast %c0_i32_52 : i32 to vector<32x128xi32>
      %c0_53 = arith.constant 0 : index
      %c0_54 = arith.constant 0 : index
      %194 = vector.load %arg4[%c0_53, %c0_54] : memref<32x128xi32, #tpu.memory_space<vmem>>, vector<32x128xi32>
      tpu.vector_store %arg4[%c0_53, %c0_54], %193 {strides = array<i32>} : memref<32x128xi32, #tpu.memory_space<vmem>>, vector<32x128xi32>,
    } else {
    }
    %c128_i32 = arith.constant 128 : i32
    %3 = arith.muli %arg1, %c128_i32 : i32
    %4 = tpu.iota {dimensions = array<i32: 1>} : vector<1x128xi32>
    %5 = vector.broadcast %3 : i32 to vector<1x128xi32>
    %6 = arith.addi %5, %4 : vector<1x128xi32>
    %c0 = arith.constant 0 : index
    %c0_1 = arith.constant 0 : index
    %7 = vector.load %arg2[%c0, %c0_1] : memref<32x3xf32, #tpu.memory_space<vmem>>, vector<32x3xf32>
    %c0_2 = arith.constant 0 : index
    %c0_3 = arith.constant 0 : index
    %8 = vector.load %arg3[%c0_2, %c0_3] : memref<3x128xf32, #tpu.memory_space<vmem>>, vector<3x128xf32>
    %cst = arith.constant 0.000000e+00 : f32
    %9 = vector.broadcast %cst : f32 to vector<32x128xf32>
    %10 = vector.extract_strided_slice %7 {offsets = [0, 0], sizes = [32, 1], strides = [1, 1]} : vector<32x3xf32> to vector<32x1xf32>
    %11 = vector.extract_strided_slice %8 {offsets = [0, 0], sizes = [1, 128], strides = [1, 1]} : vector<3x128xf32> to vector<1x128xf32>
    %12 = vector.broadcast %10 : vector<32x1xf32> to vector<32x128xf32>
    %13 = vector.broadcast %11 : vector<1x128xf32> to vector<32x128xf32>
    %14 = arith.subf %12, %13 : vector<32x128xf32>
    %15 = arith.mulf %14, %14 : vector<32x128xf32>
    %16 = arith.addf %9, %15 : vector<32x128xf32>
    %17 = vector.extract_strided_slice %7 {offsets = [0, 1], sizes = [32, 1], strides = [1, 1]} : vector<32x3xf32> to vector<32x1xf32>
    %18 = vector.extract_strided_slice %8 {offsets = [1, 0], sizes = [1, 128], strides = [1, 1]} : vector<3x128xf32> to vector<1x128xf32>
    %19 = vector.broadcast %17 : vector<32x1xf32> to vector<32x128xf32>
    %20 = vector.broadcast %18 : vector<1x128xf32> to vector<32x128xf32>
    %21 = arith.subf %19, %20 : vector<32x128xf32>
    %22 = arith.mulf %21, %21 : vector<32x128xf32>
    %23 = arith.addf %16, %22 : vector<32x128xf32>
    %24 = vector.extract_strided_slice %7 {offsets = [0, 2], sizes = [32, 1], strides = [1, 1]} : vector<32x3xf32> to vector<32x1xf32>
    %25 = vector.extract_strided_slice %8 {offsets = [2, 0], sizes = [1, 128], strides = [1, 1]} : vector<3x128xf32> to vector<1x128xf32>
    %26 = vector.broadcast %24 : vector<32x1xf32> to vector<32x128xf32>
    %27 = vector.broadcast %25 : vector<1x128xf32> to vector<32x128xf32>
    %28 = arith.subf %26, %27 : vector<32x128xf32>
    %29 = arith.mulf %28, %28 : vector<32x128xf32>
    %30 = arith.addf %23, %29 : vector<32x128xf32>
    %c64_i32 = arith.constant 64 : i32
    %31 = vector.broadcast %c64_i32 : i32 to vector<1x128xi32>
    %32 = arith.cmpi slt, %6, %31 : vector<1x128xi32>
    %cst_4 = arith.constant 0x7F800000 : f32
    %33 = vector.shape_cast %32 : vector<1x128xi1> to vector<1x128xi1>
    %34 = vector.broadcast %33 : vector<1x128xi1> to vector<32x128xi1>
    %35 = vector.broadcast %cst_4 : f32 to vector<32x128xf32>
    %36 = arith.select %34, %30, %35 : vector<32x128xi1>, vector<32x128xf32>
    %c0_5 = arith.constant 0 : index
    %c0_6 = arith.constant 0 : index
    %37 = vector.load %arg5[%c0_5, %c0_6] : memref<32x128xf32, #tpu.memory_space<vmem>>, vector<32x128xf32>
    %c0_7 = arith.constant 0 : index
    %c0_8 = arith.constant 0 : index
    %38 = vector.load %arg4[%c0_7, %c0_8] : memref<32x128xi32, #tpu.memory_space<vmem>>, vector<32x128xi32>
    %39 = tpu.iota {dimensions = array<i32: 1>} : vector<32x128xi32>
    %cst_9 = arith.constant 0x7F800000 : f32
    %40 = vector.broadcast %cst_9 : f32 to vector<32x128xf32>
    %c0_i32_10 = arith.constant 0 : i32
    %41 = vector.broadcast %c0_i32_10 : i32 to vector<32x128xi32>
    %cst_11 = arith.constant dense<0x7F800000> : vector<32xf32>
    %42 = vector.multi_reduction <minimumf>, %36, %cst_11 [1] : vector<32x128xf32> to vector<32xf32>
    %43 = vector.shape_cast %42 : vector<32xf32> to vector<32x1xf32>
    %cst_12 = arith.constant dense<0x7F800000> : vector<32xf32>
    %44 = vector.multi_reduction <minimumf>, %37, %cst_12 [1] : vector<32x128xf32> to vector<32xf32>
    %45 = vector.shape_cast %44 : vector<32xf32> to vector<32x1xf32>
    %46 = arith.minimumf %43, %45 : vector<32x1xf32>
    %47 = vector.broadcast %46 : vector<32x1xf32> to vector<32x128xf32>
    %48 = arith.cmpf oeq, %36, %47 : vector<32x128xf32>
    %c1073741824_i32 = arith.constant 1073741824 : i32
    %49 = vector.shape_cast %6 : vector<1x128xi32> to vector<1x128xi32>
    %50 = vector.broadcast %49 : vector<1x128xi32> to vector<32x128xi32>
    %51 = vector.broadcast %c1073741824_i32 : i32 to vector<32x128xi32>
    %52 = arith.select %48, %50, %51 : vector<32x128xi1>, vector<32x128xi32>
    %cst_13 = arith.constant dense<2147483647> : vector<32xi32>
    %53 = vector.multi_reduction <minsi>, %52, %cst_13 [1] : vector<32x128xi32> to vector<32xi32>
    %54 = vector.shape_cast %53 : vector<32xi32> to vector<32x1xi32>
    %55 = vector.broadcast %46 : vector<32x1xf32> to vector<32x128xf32>
    %56 = arith.cmpf oeq, %37, %55 : vector<32x128xf32>
    %c1073741824_i32_14 = arith.constant 1073741824 : i32
    %57 = vector.broadcast %c1073741824_i32_14 : i32 to vector<32x128xi32>
    %58 = arith.select %56, %38, %57 : vector<32x128xi1>, vector<32x128xi32>
    %cst_15 = arith.constant dense<2147483647> : vector<32xi32>
    %59 = vector.multi_reduction <minsi>, %58, %cst_15 [1] : vector<32x128xi32> to vector<32xi32>
    %60 = vector.shape_cast %59 : vector<32xi32> to vector<32x1xi32>
    %61 = arith.minsi %54, %60 : vector<32x1xi32>
    %c0_i32_16 = arith.constant 0 : i32
    %62 = vector.broadcast %c0_i32_16 : i32 to vector<32x128xi32>
    %63 = arith.cmpi eq, %39, %62 : vector<32x128xi32>
    %64 = vector.shape_cast %46 : vector<32x1xf32> to vector<32x1xf32>
    %65 = vector.broadcast %64 : vector<32x1xf32> to vector<32x128xf32>
    %66 = arith.select %63, %65, %40 : vector<32x128xi1>, vector<32x128xf32>
    %c0_i32_17 = arith.constant 0 : i32
    %67 = vector.broadcast %c0_i32_17 : i32 to vector<32x128xi32>
    %68 = arith.cmpi eq, %39, %67 : vector<32x128xi32>
    %69 = vector.shape_cast %61 : vector<32x1xi32> to vector<32x1xi32>
    %70 = vector.broadcast %69 : vector<32x1xi32> to vector<32x128xi32>
    %71 = arith.select %68, %70, %41 : vector<32x128xi1>, vector<32x128xi32>
    %72 = vector.broadcast %6 : vector<1x128xi32> to vector<32x128xi32>
    %73 = vector.broadcast %61 : vector<32x1xi32> to vector<32x128xi32>
    %74 = arith.cmpi eq, %72, %73 : vector<32x128xi32>
    %cst_18 = arith.constant 0x7F800000 : f32
    %75 = vector.broadcast %cst_18 : f32 to vector<32x128xf32>
    %76 = arith.select %74, %75, %36 : vector<32x128xi1>, vector<32x128xf32>
    %77 = vector.broadcast %61 : vector<32x1xi32> to vector<32x128xi32>
    %78 = arith.cmpi eq, %38, %77 : vector<32x128xi32>
    %cst_19 = arith.constant 0x7F800000 : f32
    %79 = vector.broadcast %cst_19 : f32 to vector<32x128xf32>
    %80 = arith.select %78, %79, %37 : vector<32x128xi1>, vector<32x128xf32>
    %cst_20 = arith.constant dense<0x7F800000> : vector<32xf32>
    %81 = vector.multi_reduction <minimumf>, %76, %cst_20 [1] : vector<32x128xf32> to vector<32xf32>
    %82 = vector.shape_cast %81 : vector<32xf32> to vector<32x1xf32>
    %cst_21 = arith.constant dense<0x7F800000> : vector<32xf32>
    %83 = vector.multi_reduction <minimumf>, %80, %cst_21 [1] : vector<32x128xf32> to vector<32xf32>
    %84 = vector.shape_cast %83 : vector<32xf32> to vector<32x1xf32>
    %85 = arith.minimumf %82, %84 : vector<32x1xf32>
    %86 = vector.broadcast %85 : vector<32x1xf32> to vector<32x128xf32>
    %87 = arith.cmpf oeq, %76, %86 : vector<32x128xf32>
    %c1073741824_i32_22 = arith.constant 1073741824 : i32
    %88 = vector.shape_cast %6 : vector<1x128xi32> to vector<1x128xi32>
    %89 = vector.broadcast %88 : vector<1x128xi32> to vector<32x128xi32>
    %90 = vector.broadcast %c1073741824_i32_22 : i32 to vector<32x128xi32>
    %91 = arith.select %87, %89, %90 : vector<32x128xi1>, vector<32x128xi32>
    %cst_23 = arith.constant dense<2147483647> : vector<32xi32>
    %92 = vector.multi_reduction <minsi>, %91, %cst_23 [1] : vector<32x128xi32> to vector<32xi32>
    %93 = vector.shape_cast %92 : vector<32xi32> to vector<32x1xi32>
    %94 = vector.broadcast %85 : vector<32x1xf32> to vector<32x128xf32>
    %95 = arith.cmpf oeq, %80, %94 : vector<32x128xf32>
    %c1073741824_i32_24 = arith.constant 1073741824 : i32
    %96 = vector.broadcast %c1073741824_i32_24 : i32 to vector<32x128xi32>
    %97 = arith.select %95, %38, %96 : vector<32x128xi1>, vector<32x128xi32>
    %cst_25 = arith.constant dense<2147483647> : vector<32xi32>
    %98 = vector.multi_reduction <minsi>, %97, %cst_25 [1] : vector<32x128xi32> to vector<32xi32>
    %99 = vector.shape_cast %98 : vector<32xi32> to vector<32x1xi32>
    %100 = arith.minsi %93, %99 : vector<32x1xi32>
    %c1_i32 = arith.constant 1 : i32
    %101 = vector.broadcast %c1_i32 : i32 to vector<32x128xi32>
    %102 = arith.cmpi eq, %39, %101 : vector<32x128xi32>
    %103 = vector.shape_cast %85 : vector<32x1xf32> to vector<32x1xf32>
    %104 = vector.broadcast %103 : vector<32x1xf32> to vector<32x128xf32>
    %105 = arith.select %102, %104, %66 : vector<32x128xi1>, vector<32x128xf32>
    %c1_i32_26 = arith.constant 1 : i32
    %106 = vector.broadcast %c1_i32_26 : i32 to vector<32x128xi32>
    %107 = arith.cmpi eq, %39, %106 : vector<32x128xi32>
    %108 = vector.shape_cast %100 : vector<32x1xi32> to vector<32x1xi32>
    %109 = vector.broadcast %108 : vector<32x1xi32> to vector<32x128xi32>
    %110 = arith.select %107, %109, %71 : vector<32x128xi1>, vector<32x128xi32>
    %111 = vector.broadcast %6 : vector<1x128xi32> to vector<32x128xi32>
    %112 = vector.broadcast %100 : vector<32x1xi32> to vector<32x128xi32>
    %113 = arith.cmpi eq, %111, %112 : vector<32x128xi32>
    %cst_27 = arith.constant 0x7F800000 : f32
    %114 = vector.broadcast %cst_27 : f32 to vector<32x128xf32>
    %115 = arith.select %113, %114, %76 : vector<32x128xi1>, vector<32x128xf32>
    %116 = vector.broadcast %100 : vector<32x1xi32> to vector<32x128xi32>
    %117 = arith.cmpi eq, %38, %116 : vector<32x128xi32>
    %cst_28 = arith.constant 0x7F800000 : f32
    %118 = vector.broadcast %cst_28 : f32 to vector<32x128xf32>
    %119 = arith.select %117, %118, %80 : vector<32x128xi1>, vector<32x128xf32>
    %cst_29 = arith.constant dense<0x7F800000> : vector<32xf32>
    %120 = vector.multi_reduction <minimumf>, %115, %cst_29 [1] : vector<32x128xf32> to vector<32xf32>
    %121 = vector.shape_cast %120 : vector<32xf32> to vector<32x1xf32>
    %cst_30 = arith.constant dense<0x7F800000> : vector<32xf32>
    %122 = vector.multi_reduction <minimumf>, %119, %cst_30 [1] : vector<32x128xf32> to vector<32xf32>
    %123 = vector.shape_cast %122 : vector<32xf32> to vector<32x1xf32>
    %124 = arith.minimumf %121, %123 : vector<32x1xf32>
    %125 = vector.broadcast %124 : vector<32x1xf32> to vector<32x128xf32>
    %126 = arith.cmpf oeq, %115, %125 : vector<32x128xf32>
    %c1073741824_i32_31 = arith.constant 1073741824 : i32
    %127 = vector.shape_cast %6 : vector<1x128xi32> to vector<1x128xi32>
    %128 = vector.broadcast %127 : vector<1x128xi32> to vector<32x128xi32>
    %129 = vector.broadcast %c1073741824_i32_31 : i32 to vector<32x128xi32>
    %130 = arith.select %126, %128, %129 : vector<32x128xi1>, vector<32x128xi32>
    %cst_32 = arith.constant dense<2147483647> : vector<32xi32>
    %131 = vector.multi_reduction <minsi>, %130, %cst_32 [1] : vector<32x128xi32> to vector<32xi32>
    %132 = vector.shape_cast %131 : vector<32xi32> to vector<32x1xi32>
    %133 = vector.broadcast %124 : vector<32x1xf32> to vector<32x128xf32>
    %134 = arith.cmpf oeq, %119, %133 : vector<32x128xf32>
    %c1073741824_i32_33 = arith.constant 1073741824 : i32
    %135 = vector.broadcast %c1073741824_i32_33 : i32 to vector<32x128xi32>
    %136 = arith.select %134, %38, %135 : vector<32x128xi1>, vector<32x128xi32>
    %cst_34 = arith.constant dense<2147483647> : vector<32xi32>
    %137 = vector.multi_reduction <minsi>, %136, %cst_34 [1] : vector<32x128xi32> to vector<32xi32>
    %138 = vector.shape_cast %137 : vector<32xi32> to vector<32x1xi32>
    %139 = arith.minsi %132, %138 : vector<32x1xi32>
    %c2_i32 = arith.constant 2 : i32
    %140 = vector.broadcast %c2_i32 : i32 to vector<32x128xi32>
    %141 = arith.cmpi eq, %39, %140 : vector<32x128xi32>
    %142 = vector.shape_cast %124 : vector<32x1xf32> to vector<32x1xf32>
    %143 = vector.broadcast %142 : vector<32x1xf32> to vector<32x128xf32>
    %144 = arith.select %141, %143, %105 : vector<32x128xi1>, vector<32x128xf32>
    %c2_i32_35 = arith.constant 2 : i32
    %145 = vector.broadcast %c2_i32_35 : i32 to vector<32x128xi32>
    %146 = arith.cmpi eq, %39, %145 : vector<32x128xi32>
    %147 = vector.shape_cast %139 : vector<32x1xi32> to vector<32x1xi32>
    %148 = vector.broadcast %147 : vector<32x1xi32> to vector<32x128xi32>
    %149 = arith.select %146, %148, %110 : vector<32x128xi1>, vector<32x128xi32>
    %150 = vector.broadcast %6 : vector<1x128xi32> to vector<32x128xi32>
    %151 = vector.broadcast %139 : vector<32x1xi32> to vector<32x128xi32>
    %152 = arith.cmpi eq, %150, %151 : vector<32x128xi32>
    %cst_36 = arith.constant 0x7F800000 : f32
    %153 = vector.broadcast %cst_36 : f32 to vector<32x128xf32>
    %154 = arith.select %152, %153, %115 : vector<32x128xi1>, vector<32x128xf32>
    %155 = vector.broadcast %139 : vector<32x1xi32> to vector<32x128xi32>
    %156 = arith.cmpi eq, %38, %155 : vector<32x128xi32>
    %cst_37 = arith.constant 0x7F800000 : f32
    %157 = vector.broadcast %cst_37 : f32 to vector<32x128xf32>
    %158 = arith.select %156, %157, %119 : vector<32x128xi1>, vector<32x128xf32>
    %cst_38 = arith.constant dense<0x7F800000> : vector<32xf32>
    %159 = vector.multi_reduction <minimumf>, %154, %cst_38 [1] : vector<32x128xf32> to vector<32xf32>
    %160 = vector.shape_cast %159 : vector<32xf32> to vector<32x1xf32>
    %cst_39 = arith.constant dense<0x7F800000> : vector<32xf32>
    %161 = vector.multi_reduction <minimumf>, %158, %cst_39 [1] : vector<32x128xf32> to vector<32xf32>
    %162 = vector.shape_cast %161 : vector<32xf32> to vector<32x1xf32>
    %163 = arith.minimumf %160, %162 : vector<32x1xf32>
    %164 = vector.broadcast %163 : vector<32x1xf32> to vector<32x128xf32>
    %165 = arith.cmpf oeq, %154, %164 : vector<32x128xf32>
    %c1073741824_i32_40 = arith.constant 1073741824 : i32
    %166 = vector.shape_cast %6 : vector<1x128xi32> to vector<1x128xi32>
    %167 = vector.broadcast %166 : vector<1x128xi32> to vector<32x128xi32>
    %168 = vector.broadcast %c1073741824_i32_40 : i32 to vector<32x128xi32>
    %169 = arith.select %165, %167, %168 : vector<32x128xi1>, vector<32x128xi32>
    %cst_41 = arith.constant dense<2147483647> : vector<32xi32>
    %170 = vector.multi_reduction <minsi>, %169, %cst_41 [1] : vector<32x128xi32> to vector<32xi32>
    %171 = vector.shape_cast %170 : vector<32xi32> to vector<32x1xi32>
    %172 = vector.broadcast %163 : vector<32x1xf32> to vector<32x128xf32>
    %173 = arith.cmpf oeq, %158, %172 : vector<32x128xf32>
    %c1073741824_i32_42 = arith.constant 1073741824 : i32
    %174 = vector.broadcast %c1073741824_i32_42 : i32 to vector<32x128xi32>
    %175 = arith.select %173, %38, %174 : vector<32x128xi1>, vector<32x128xi32>
    %cst_43 = arith.constant dense<2147483647> : vector<32xi32>
    %176 = vector.multi_reduction <minsi>, %175, %cst_43 [1] : vector<32x128xi32> to vector<32xi32>
    %177 = vector.shape_cast %176 : vector<32xi32> to vector<32x1xi32>
    %178 = arith.minsi %171, %177 : vector<32x1xi32>
    %c3_i32 = arith.constant 3 : i32
    %179 = vector.broadcast %c3_i32 : i32 to vector<32x128xi32>
    %180 = arith.cmpi eq, %39, %179 : vector<32x128xi32>
    %181 = vector.shape_cast %163 : vector<32x1xf32> to vector<32x1xf32>
    %182 = vector.broadcast %181 : vector<32x1xf32> to vector<32x128xf32>
    %183 = arith.select %180, %182, %144 : vector<32x128xi1>, vector<32x128xf32>
    %c3_i32_44 = arith.constant 3 : i32
    %184 = vector.broadcast %c3_i32_44 : i32 to vector<32x128xi32>
    %185 = arith.cmpi eq, %39, %184 : vector<32x128xi32>
    %186 = vector.shape_cast %178 : vector<32x1xi32> to vector<32x1xi32>
    %187 = vector.broadcast %186 : vector<32x1xi32> to vector<32x128xi32>
    %188 = arith.select %185, %187, %149 : vector<32x128xi1>, vector<32x128xi32>
    %c0_45 = arith.constant 0 : index
    %c0_46 = arith.constant 0 : index
    %189 = vector.load %arg5[%c0_45, %c0_46] : memref<32x128xf32, #tpu.memory_space<vmem>>, vector<32x128xf32>
    tpu.vector_store %arg5[%c0_45, %c0_46], %183 {strides = array<i32>} : memref<32x128xf32, #tpu.memory_space<vmem>>, vector<32x128xf32>,
    %c0_47 = arith.constant 0 : index
    %c0_48 = arith.constant 0 : index
    %190 = vector.load %arg4[%c0_47, %c0_48] : memref<32x128xi32, #tpu.memory_space<vmem>>, vector<32x128xi32>
    tpu.vector_store %arg4[%c0_47, %c0_48], %188 {strides = array<i32>} : memref<32x128xi32, #tpu.memory_space<vmem>>, vector<32x128xi32>,
    return
  }
  func.func @transform_0(%arg0: i32, %arg1: i32) -> (i32, i32) {
    %c0_i32 = arith.constant 0 : i32
    %c0_i32_0 = arith.constant 0 : i32
    return %arg0, %c0_i32 : i32, i32
  }
  func.func @transform_1(%arg0: i32, %arg1: i32) -> (i32, i32) {
    %c0_i32 = arith.constant 0 : i32
    %c0_i32_0 = arith.constant 0 : i32
    return %c0_i32, %arg1 : i32, i32
  }
  func.func @transform_2(%arg0: i32, %arg1: i32) -> (i32, i32) {
    %c0_i32 = arith.constant 0 : i32
    %c0_i32_0 = arith.constant 0 : i32
    return %arg0, %c0_i32 : i32, i32
  }
}

</mosaic_0001>

<bundles_post_ra>
// kernel: tpu_custom_call.1
= control target key start
LH: loop header
LB: loop body
LE: loop exit
PB: predicated region body
PF: predicated region fallthrough
CT: control target
= control target key end

     0   :  { %7 = vsyncpa [#allocation4], 0  ;;  %s1684_s0 = inlined_call_operand.vmem [shape: f32[64,3], index: 0, kind: input, shape index: {}]   ;;  %s1685_s1 = inlined_call_operand.vmem [shape: f32[3,128], index: 1, kind: input, shape index: {}]   ;;  %s1686_s2 = inlined_call_operand.hbm [shape: s32[64,128], index: 2, kind: output, shape index: {}]  }
   0x1   :  { %9 = vsyncpa [#allocation4 + $0x1], 0  ;;  %s1325_s9 = smov 0   ;;  %s1327_s10 = smov 0  }
   0x2   :  { %s1329_s11 = smov 0   ;;  %s1331_s12 = smov 0  }
   0x3   :  { %s1333_s13 = smov 0   ;;  %s1335_s14 = smov 0  }
   0x4 LB: > { %s1126_s15 = sadd.s32 4294967295, %s1300_s14   ;;  %s1127_s16 = sadd.s32 4294967294, %s1300_s14   ;;  %s1300_s14 = sphi %s1335_s14, %s15_s14   ;;  %s1296_s13 = sphi %s1333_s13, %s1693_s13   ;;  %s1292_s12 = sphi %s1331_s12, %s1692_s12   ;;  %s1288_s11 = sphi %s1329_s11, %s1691_s11   ;;  %s1284_s10 = sphi %s1327_s10, %s1690_s10   ;;  %s1280_s9 = sphi %s1325_s9, %s1689_s9  }
   0x5   : > { %s27_s17 = sadd.s32 1, %s1296_s13  ;;  %s86_s18 = sadd.s32 1, %s1288_s11 }
   0x6   : > { %p29_p0 = scmp.ge.s32.totalorder %s27_s17, 2  ;;  %p96_p1 = scmp.ne.s32.totalorder %s1288_s11, %s1284_s10 }
   0x7   : > { %p97_p2 = scmp.eq.s32.totalorder %s1126_s15, 1  ;;  %p102_p3 = scmp.ne.s32.totalorder %s1284_s10, %s1280_s9 }
   0x8   : > { %s1695_s17 = smov (%p29_p0, %s27_s17), 0  ;;  %p103_p5 = scmp.eq.s32.totalorder %s1127_s16, 1 }
   0x9   : > { %p1365_p4 = por %p97_p2, %p96_p1  ;;  %s83_s20 = ssub.s32 %s1296_s13, %s1695_s17 }
   0xa   : > { %p1131_p6 = scmp.ge.s32.totalorder %s1300_s14, 1  ;;  %p84_p7 = scmp.eq.s32.totalorder %s83_s20, 0 }
   0xb   : > { %p1372_p8 = por %p103_p5, %p102_p3  ;;  %p137_p9 = scmp.lt.s32.totalorder %s1300_s14, 3 }
   0xc   : > { %s1378_s22 = scalar_select %p84_p7, %s1288_s11, %s86_s18  }
   0xd   : > { %p138_p10 = pnand %p1131_p6, %p137_p9 }
   0xe   : > { %s1133_s23 = sshll.u32 (!%p138_p10), %s1292_s12, 2  ;;  %s160_s30 = sand.u32 (!%p138_p10), 1, %s1284_s10  }
   0xf   : > { %141 = sbr.rel (%p138_p10) target bundleno = 1970 (0x7b2), region = 28  ;;  %p164_p11 = scmp.lt.s32.totalorder (!%p138_p10), %s1133_s23, 7 }
  0x10   : > { %s1132_s3 = sshll.u32 (!%p138_p10), %s160_s30, 5  ;;  %s1140_s5 = sshll.u32 (!%p138_p10), %s1292_s12, 9 }
  0x11   : > { %s162_s4 = scalar_lea.vmem (!%p138_p10), [#allocation3], %s1132_s3  ;;  %s1630_s15 = scalar_lea.hbm (!%p138_p10), %s1686_s2, %s1140_s5 }
  0x12   : > { %s1041_s6 = sshll.u32 (!%p138_p10), %s162_s4, 4  ;;  %s1639_s12 = scalar_lea.sflag (!%p138_p10), [#allocation4], %s160_s30  ;;  %s1632_s6 = int_to_ptr.vmem [resolvable:$true] %s1041_s6 }
  0x13   : > { %s1224_s16 = scalar_lea.vmem (!%p138_p10), %s1632_s6, 512  ;;  %s1307_s18 = smov (!%p138_p10), [#allocation3]  }
  0x14   : > { %v1302_v0 = vmov 0   ;;  %s1697_s23 = smov (!%p164_p11, %s1133_s23), 7  ;;  %v1303_v5 = vmov 1   ;;  %v1304_v6 = vmov 2   ;;  %v1305_v7 = vmov inf   ;;  %p1225_p12 = scmp.ne.s32.totalorder %s1632_s6, %s1224_s16 }
  0x15   : > { %1219 = vset.pattern.permute.xlu1 %v1302_v0  ;;  %1218 = vset.pattern.permute.xlu0 %v1302_v0  ;;  %s1134_s24 = sshll.u32 %s1697_s23, 3  ;;  %v187_v8 = vlaneseq  ;;  %v195_v15 = vld [vmem:[%s1685_s1] sm:$0x7]  ;;  %s1228_s20 = sshll.u32 %s1307_s18, 4  ;;  %s1229_s20 = int_to_ptr.vmem [resolvable:$false] %s1228_s20 }
  0x16   : > { %s167_s27 = scalar_lea.vmem %s1684_s0, %s1134_s24  ;;  %p1226_p13 = pnand %p1225_p12, %p1365_p4 }
  0x17   : > { %v193_v1 = vld [vmem:[%s167_s27 + $0x10] sm:$0xff]  ;;  %v191_v2 = vld [vmem:[%s167_s27] sm:$0xff]  ;;  %v194_v3 = vld [vmem:[%s167_s27 + $0x18] sm:$0xff]  ;;  %v217_v11 = vshrl.u32 %v187_v8, 7  ;;  %v1389_v32 = vand.u32 127, %v187_v8  ;;  %s1230_s23 = scalar_lea.vmem %s1229_s20, 1024  ;;  %p1231_p1 = scmp.lt.s32.totalorder %s1632_s6, %s1229_s20 }
  0x18   : > { %208 = vperm.xlu1 %1219, %v193_v1   ;;  %198 = vperm.xlu0 %1218, %v191_v2   ;;  %v192_v4 = vld [vmem:[%s167_s27 + $0x8] sm:$0xff]  ;;  %p1227_p0 = pneg %p1226_p13  ;;  %p1232_p2 = scmp.lt.s32.totalorder %s1230_s23, %s1224_s16 }
  0x19   : > { %v250_v14 = vsub.s32 1, %v217_v11  ;;  %v218_v16 = vsub.s32 0, %v217_v11  ;;  %v282_v20 = vsub.s32 2, %v217_v11  ;;  %vm296_vm0 = vcmp.lt.s32.totalorder %v1389_v32, 64 }
  0x1a   : > { %p1233_p3 = por %p1232_p2, %p1231_p1 }
  0x1b   : > { %v251_v17 = vrot.slane %v195_v15, %v250_v14  ;;  %v219_v21 = vrot.slane %v195_v15, %v218_v16  ;;  %v283_v28 = vrot.slane %v195_v15, %v282_v20  ;;  %v1306_v20 = vmov 1073741824  }
  0x1c   : > { %213 = vperm.xlu1 %1219, %v194_v3   ;;  %203 = vperm.xlu0 %1218, %v192_v4   ;;  %p1234_p5 = pnand %p1233_p3, %p1227_p0 }
  0x20   : > { %1221 = vset.pattern.permute.xlu1 %v1303_v5  ;;  %1220 = vset.pattern.permute.xlu0 %v1303_v5 }
  0x21   : > { %237 = vperm.xlu1 %1221, %v192_v4   ;;  %233 = vperm.xlu0 %1220, %v191_v2  }
  0x25   : > { %241 = vperm.xlu1 %1221, %v193_v1   ;;  %245 = vperm.xlu0 %1220, %v194_v3  }
  0x29   : > { %1222 = vset.pattern.permute.xlu1 %v1304_v6  ;;  %1223 = vset.pattern.permute.xlu0 %v1304_v6 }
  0x2a   : > { %265 = vperm.xlu1 %1222, %v191_v2   ;;  %269 = vperm.xlu0 %1223, %v192_v4  }
  0x2e   : > { %273 = vperm.xlu1 %1222, %v193_v1  }
  0x32   : > { %277 = vperm.xlu1 %1222, %v194_v3  }
  0x49   : > { %321 = vmin.xlane.f32.xlu0 %v1305_v7 }
  0x56   : > { %319 = vmin.xlane.f32.xlu1 %v1305_v7 }
  0x93   : > { %v209_v9 = vpop.permute.xlu1 %208  ;;  %v199_v10 = vpop.permute.xlu0 %198 }
  0x94   : > { %v220_v27 = vsub.f32 %v199_v10, %v219_v21  ;;  %v222_v33 = vsub.f32 %v209_v9, %v219_v21 }
  0x96   : > { %v224_v37 = vmul.f32 %v220_v27, %v220_v27  ;;  %v226_v46 = vmul.f32 %v222_v33, %v222_v33 }
  0x97   : > { %v214_v12 = vpop.permute.xlu1 %213  ;;  %v204_v13 = vpop.permute.xlu0 %203 }
  0x98   : > { %v221_v26 = vsub.f32 %v204_v13, %v219_v21  ;;  %v223_v48 = vsub.f32 %v214_v12, %v219_v21 }
  0x9a   : > { %v225_v34 = vmul.f32 %v221_v26, %v221_v26  ;;  %v227_v58 = vmul.f32 %v223_v48, %v223_v48 }
  0x9c   : > { %v238_v18 = vpop.permute.xlu1 %237  ;;  %v234_v19 = vpop.permute.xlu0 %233 }
  0x9d   : > { %v253_v22 = vsub.f32 %v238_v18, %v251_v17  ;;  %v252_v23 = vsub.f32 %v234_v19, %v251_v17 }
  0x9f   : > { %v257_v29 = vmul.f32 %v253_v22, %v253_v22  ;;  %v256_v30 = vmul.f32 %v252_v23, %v252_v23 }
  0xa0   : > { %v242_v24 = vpop.permute.xlu1 %241  ;;  %v246_v25 = vpop.permute.xlu0 %245 }
  0xa1   : > { %v254_v31 = vsub.f32 %v242_v24, %v251_v17  ;;  %v261_v40 = vadd.f32 %v257_v29, %v225_v34  ;;  %v255_v41 = vsub.f32 %v246_v25, %v251_v17  ;;  %v260_v42 = vadd.f32 %v256_v30, %v224_v37 }
  0xa3   : > { %v258_v43 = vmul.f32 %v254_v31, %v254_v31  ;;  %v259_v52 = vmul.f32 %v255_v41, %v255_v41 }
  0xa5   : > { %v266_v35 = vpop.permute.xlu1 %265  ;;  %v270_v36 = vpop.permute.xlu0 %269  ;;  %v262_v53 = vadd.f32 %v258_v43, %v226_v46  ;;  %v263_v61 = vadd.f32 %v259_v52, %v227_v58 }
  0xa6   : > { %v284_v38 = vsub.f32 %v266_v35, %v283_v28  ;;  %v285_v39 = vsub.f32 %v270_v36, %v283_v28 }
  0xa8   : > { %v288_v44 = vmul.f32 %v284_v38, %v284_v38  ;;  %v289_v45 = vmul.f32 %v285_v39, %v285_v39 }
  0xa9   : > { %v274_v47 = vpop.permute.xlu1 %273 }
  0xaa   : > { %v286_v49 = vsub.f32 %v274_v47, %v283_v28  ;;  %v292_v50 = vadd.f32 %v288_v44, %v260_v42  ;;  %v293_v51 = vadd.f32 %v289_v45, %v261_v40 }
  0xac   : > { %v290_v54 = vmul.f32 %v286_v49, %v286_v49  ;;  %v1394_v55 = vsel %vm296_vm0, %v292_v50, inf  ;;  %v1398_v56 = vsel %vm296_vm0, %v293_v51, inf }
  0xad   : > { %v278_v57 = vpop.permute.xlu1 %277  ;;  %311 = vmin.xlane.f32.xlu0 %v1394_v55  ;;  %313 = vmin.xlane.f32.xlu1 %v1398_v56 }
  0xae   : > { %v294_v59 = vadd.f32 %v290_v54, %v262_v53  ;;  %v287_v60 = vsub.f32 %v278_v57, %v283_v28 }
  0xb0   : > { %v291_v62 = vmul.f32 %v287_v60, %v287_v60  ;;  %v1404_v63 = vsel %vm296_vm0, %v294_v59, inf }
  0xb1   : > { %315 = vmin.xlane.f32.xlu0 %v1404_v63  ;;  %323 = vmin.xlane.f32.xlu1 %v1305_v7 }
  0xb2   : > { %v295_v0 = vadd.f32 %v291_v62, %v263_v61 }
  0xb4   : > { %v1410_v1 = vsel %vm296_vm0, %v295_v0, inf }
  0xb5   : > { %317 = vmin.xlane.f32.xlu0 %v1410_v1 }
  0xb9   : > { %325 = vmin.xlane.f32.xlu0 %v1305_v7 }
  0xd2   : > { %v322_v3 = vpop.xlane.xlu0 %321 }
  0xdf   : > { %v320_v2 = vpop.xlane.xlu1 %319 }
 0x136   : > { %v314_v4 = vpop.xlane.xlu1 %313  ;;  %v312_v5 = vpop.xlane.xlu0 %311 }
 0x137   : > { %v328_v6 = vmin.f32 %v314_v4, %v322_v3  ;;  %v327_v8 = vmin.f32 %v312_v5, %v320_v2 }
 0x139   : > { %vm332_vm1 = vcmp.eq.f32.partialorder %v1398_v56, %v328_v6  ;;  %vm331_vm2 = vcmp.eq.f32.partialorder %v1394_v55, %v327_v8  ;;  %vm1141_vm3 = vcmp.eq.f32.partialorder %v327_v8, inf  ;;  %vm1142_vm6 = vcmp.eq.f32.partialorder %v328_v6, inf }
 0x13a   : > { %v324_v9 = vpop.xlane.xlu1 %323  ;;  %v316_v10 = vpop.xlane.xlu0 %315  ;;  %v336_v11 = vsel %vm332_vm1, %v1389_v32, 1073741824  ;;  %v335_v12 = vsel %vm331_vm2, %v1389_v32, 1073741824  ;;  %v399_v21 = vsel %vm1141_vm3, 0, %v1306_v20  ;;  %v400_v31 = vsel %vm1142_vm6, 0, %v1306_v20 }
 0x13b   : > { %v329_v13 = vmin.f32 %v316_v10, %v324_v9  ;;  %v354_v14 = vshra.s32 %v336_v11, 16  ;;  %v340_v15 = vshra.s32 %v335_v12, 16  ;;  %v404_v24 = vshra.s32 %v399_v21, 16 }
 0x13c   : > { %v418_v36 = vshra.s32 %v400_v31, 16  ;;  %v353_v41 = vand.u32 65535, %v336_v11  ;;  %v339_v42 = vand.u32 65535, %v335_v12  ;;  %v403_v52 = vand.u32 65535, %v399_v21 }
 0x13d   : > { %vm333_vm4 = vcmp.eq.f32.partialorder %v1404_v63, %v329_v13  ;;  %v356_v16 = vcvt.s32.f32 %v354_v14  ;;  %v342_v17 = vcvt.s32.f32 %v340_v15  ;;  %vm1143_vm5 = vcmp.eq.f32.partialorder %v329_v13, inf }
 0x13e   : > { %v318_v18 = vpop.xlane.xlu0 %317  ;;  %v337_v19 = vsel %vm333_vm4, %v1389_v32, 1073741824  ;;  %v401_v26 = vsel %vm1143_vm5, 0, %v1306_v20  ;;  %v406_v28 = vcvt.s32.f32 %v404_v24  ;;  %v420_v38 = vcvt.s32.f32 %v418_v36 }
 0x13f   : > { %357 = vmin.xlane.f32.xlu0 %v356_v16  ;;  %343 = vmin.xlane.f32.xlu1 %v342_v17  ;;  %v368_v22 = vshra.s32 %v337_v19, 16  ;;  %v432_v29 = vshra.s32 %v401_v26, 16  ;;  %v355_v45 = vcvt.s32.f32 %v353_v41  ;;  %v341_v46 = vcvt.s32.f32 %v339_v42 }
 0x140   : > { %v367_v47 = vand.u32 65535, %v337_v19  ;;  %v405_v57 = vcvt.s32.f32 %v403_v52  ;;  %v431_v59 = vand.u32 65535, %v401_v26  ;;  %v417_v3 = vand.u32 65535, %v400_v31 }
 0x141   : > { %v370_v23 = vcvt.s32.f32 %v368_v22  ;;  %v434_v35 = vcvt.s32.f32 %v432_v29 }
 0x142   : > { %v326_v25 = vpop.xlane.xlu0 %325  ;;  %v369_v51 = vcvt.s32.f32 %v367_v47  ;;  %v433_v2 = vcvt.s32.f32 %v431_v59  ;;  %v419_v8 = vcvt.s32.f32 %v417_v3 }
 0x143   : > { %v330_v27 = vmin.f32 %v318_v18, %v326_v25  ;;  %371 = vmin.xlane.f32.xlu1 %v370_v23 }
 0x145   : > { %vm334_vm7 = vcmp.eq.f32.partialorder %v1410_v1, %v330_v27  ;;  %vm1144_vm8 = vcmp.eq.f32.partialorder %v330_v27, inf }
 0x146   : > { %v338_v30 = vsel %vm334_vm7, %v1389_v32, 1073741824  ;;  %v402_v37 = vsel %vm1144_vm8, 0, %v1306_v20 }
 0x147   : > { %407 = vmin.xlane.f32.xlu1 %v406_v28  ;;  %v382_v33 = vshra.s32 %v338_v30, 16  ;;  %v446_v39 = vshra.s32 %v402_v37, 16  ;;  %v381_v58 = vand.u32 65535, %v338_v30  ;;  %v445_v9 = vand.u32 65535, %v402_v37 }
 0x149   : > { %v384_v34 = vcvt.s32.f32 %v382_v33  ;;  %v448_v40 = vcvt.s32.f32 %v446_v39  ;;  %v383_v0 = vcvt.s32.f32 %v381_v58  ;;  %v447_v12 = vcvt.s32.f32 %v445_v9 }
 0x14b   : > { %385 = vmin.xlane.f32.xlu0 %v384_v34  ;;  %435 = vmin.xlane.f32.xlu1 %v434_v35 }
 0x14f   : > { %421 = vmin.xlane.f32.xlu0 %v420_v38 }
 0x153   : > { %449 = vmin.xlane.f32.xlu0 %v448_v40 }
 0x1c8   : > { %v344_v43 = vpop.xlane.xlu1 %343  ;;  %v1426_v44 = vpop.xlane.xlu0 %357 }
 0x1c9   : > { %vm359_vm9 = vcmp.eq.f32.partialorder %v356_v16, %v1426_v44  ;;  %vm345_vm10 = vcmp.eq.f32.partialorder %v342_v17, %v344_v43  ;;  %v350_v16 = vcvt.f32.s32 %v344_v43  ;;  %v364_v30 = vcvt.f32.s32 %v1426_v44 }
 0x1ca   : > { %v360_v48 = vsel %vm359_vm9, %v355_v45, inf  ;;  %v346_v49 = vsel %vm345_vm10, %v341_v46, inf }
 0x1cb   : > { %361 = vmin.xlane.f32.xlu0 %v360_v48  ;;  %347 = vmin.xlane.f32.xlu1 %v346_v49  ;;  %v365_v42 = vshll.u32 %v364_v30, 16 }
 0x1cc   : > { %v372_v50 = vpop.xlane.xlu1 %371 }
 0x1cd   : > { %vm373_vm11 = vcmp.eq.f32.partialorder %v370_v23, %v372_v50  ;;  %v378_v19 = vcvt.f32.s32 %v372_v50  ;;  %v351_v23 = vshll.u32 %v350_v16, 16 }
 0x1ce   : > { %v374_v53 = vsel %vm373_vm11, %v369_v51, inf }
 0x1cf   : > { %375 = vmin.xlane.f32.xlu1 %v374_v53  ;;  %v379_v31 = vshll.u32 %v378_v19, 16 }
 0x1d0   : > { %v408_v54 = vpop.xlane.xlu1 %407 }
 0x1d1   : > { %vm409_vm12 = vcmp.eq.f32.partialorder %v406_v28, %v408_v54  ;;  %v414_v17 = vcvt.f32.s32 %v408_v54 }
 0x1d2   : > { %v410_v60 = vsel %vm409_vm12, %v405_v57, inf }
 0x1d3   : > { %411 = vmin.xlane.f32.xlu1 %v410_v60  ;;  %v415_v24 = vshll.u32 %v414_v17, 16 }
 0x1d4   : > { %v1429_v61 = vpop.xlane.xlu0 %385  ;;  %v436_v62 = vpop.xlane.xlu1 %435 }
 0x1d5   : > { %vm387_vm13 = vcmp.eq.f32.partialorder %v384_v34, %v1429_v61  ;;  %vm437_vm14 = vcmp.eq.f32.partialorder %v434_v35, %v436_v62  ;;  %v442_v25 = vcvt.f32.s32 %v436_v62  ;;  %v392_v43 = vcvt.f32.s32 %v1429_v61 }
 0x1d6   : > { %v388_v4 = vsel %vm387_vm13, %v383_v0, inf  ;;  %v438_v5 = vsel %vm437_vm14, %v433_v2, inf }
 0x1d7   : > { %389 = vmin.xlane.f32.xlu0 %v388_v4  ;;  %439 = vmin.xlane.f32.xlu1 %v438_v5  ;;  %v443_v35 = vshll.u32 %v442_v25, 16 }
 0x1d8   : > { %v422_v6 = vpop.xlane.xlu0 %421 }
 0x1d9   : > { %vm423_vm15 = vcmp.eq.f32.partialorder %v420_v38, %v422_v6  ;;  %v428_v36 = vcvt.f32.s32 %v422_v6 }
 0x1da   : > { %v424_v10 = vsel %vm423_vm15, %v419_v8, inf }
 0x1db   : > { %425 = vmin.xlane.f32.xlu0 %v424_v10  ;;  %500 = vmin.xlane.f32.xlu1 %v1305_v7  ;;  %v429_v46 = vshll.u32 %v428_v36, 16 }
 0x1dc   : > { %v450_v11 = vpop.xlane.xlu0 %449 }
 0x1dd   : > { %vm451_vm0 = vcmp.eq.f32.partialorder %v448_v40, %v450_v11  ;;  %v456_v47 = vcvt.f32.s32 %v450_v11 }
 0x1de   : > { %v452_v13 = vsel %vm451_vm0, %v447_v12, inf }
 0x1df   : > { %453 = vmin.xlane.f32.xlu0 %v452_v13  ;;  %v457_v57 = vshll.u32 %v456_v47, 16 }
 0x1e3   : > { %502 = vmin.xlane.f32.xlu0 %v1305_v7 }
 0x254   : > { %v348_v14 = vpop.xlane.xlu1 %347  ;;  %v362_v21 = vpop.xlane.xlu0 %361 }
 0x255   : > { %v349_v18 = vcvt.f32.s32 %v348_v14  ;;  %v363_v39 = vcvt.f32.s32 %v362_v21 }
 0x257   : > { %v352_v27 = vadd.s32 %v351_v23, %v349_v18  ;;  %v366_v50 = vadd.s32 %v365_v42, %v363_v39 }
 0x258   : > { %v376_v15 = vpop.xlane.xlu1 %375 }
 0x259   : > { %v377_v28 = vcvt.f32.s32 %v376_v15 }
 0x25b   : > { %v380_v40 = vadd.s32 %v379_v31, %v377_v28 }
 0x25c   : > { %v412_v22 = vpop.xlane.xlu1 %411 }
 0x25d   : > { %v413_v26 = vcvt.f32.s32 %v412_v22 }
 0x25f   : > { %v416_v29 = vadd.s32 %v415_v24, %v413_v26 }
 0x260   : > { %v390_v33 = vpop.xlane.xlu0 %389  ;;  %v440_v34 = vpop.xlane.xlu1 %439 }
 0x261   : > { %vm459_vm1 = vcmp.lt.s32.totalorder %v352_v27, %v416_v29  ;;  %v441_v37 = vcvt.f32.s32 %v440_v34  ;;  %v391_v51 = vcvt.f32.s32 %v390_v33 }
 0x262   : > { %v1435_v38 = vsel %vm459_vm1, %v352_v27, %v416_v29 }
 0x263   : > { %v444_v41 = vadd.s32 %v443_v35, %v441_v37  ;;  %vm476_vm2 = vcmp.eq.s32.totalorder %v1389_v32, %v1435_v38 }
 0x264   : > { %v426_v45 = vpop.xlane.xlu0 %425  ;;  %v1441_v44 = vsel %vm476_vm2, inf, %v1394_v55  ;;  %v393_v55 = vshll.u32 %v392_v43, 16  ;;  %v501_v2 = vpop.xlane.xlu1 %500 }
 0x265   : > { %vm463_vm3 = vcmp.lt.s32.totalorder %v380_v40, %v444_v41  ;;  %v427_v48 = vcvt.f32.s32 %v426_v45  ;;  %492 = vmin.xlane.f32.xlu1 %v1441_v44 }
 0x266   : > { %v1444_v49 = vsel %vm463_vm3, %v380_v40, %v444_v41  ;;  %v394_v60 = vadd.s32 %v393_v55, %v391_v51 }
 0x267   : > { %v430_v52 = vadd.s32 %v429_v46, %v427_v48  ;;  %vm478_vm4 = vcmp.eq.s32.totalorder %v1389_v32, %v1444_v49 }
 0x268   : > { %v454_v53 = vpop.xlane.xlu0 %453  ;;  %v1449_v54 = vsel %vm478_vm4, inf, %v1404_v63 }
 0x269   : > { %vm461_vm5 = vcmp.lt.s32.totalorder %v366_v50, %v430_v52  ;;  %v455_v58 = vcvt.f32.s32 %v454_v53  ;;  %496 = vmin.xlane.f32.xlu1 %v1449_v54 }
 0x26a   : > { %v1452_v59 = vsel %vm461_vm5, %v366_v50, %v430_v52 }
 0x26b   : > { %v458_v61 = vadd.s32 %v457_v57, %v455_v58  ;;  %vm477_vm6 = vcmp.eq.s32.totalorder %v1389_v32, %v1452_v59 }
 0x26c   : > { %v1457_v62 = vsel %vm477_vm6, inf, %v1398_v56  ;;  %v503_v4 = vpop.xlane.xlu0 %502 }
 0x26d   : > { %vm465_vm7 = vcmp.lt.s32.totalorder %v394_v60, %v458_v61  ;;  %494 = vmin.xlane.f32.xlu0 %v1457_v62  ;;  %504 = vmin.xlane.f32.xlu1 %v1305_v7 }
 0x26e   : > { %v1461_v63 = vsel %vm465_vm7, %v394_v60, %v458_v61 }
 0x26f   : > { %vm479_vm8 = vcmp.eq.s32.totalorder %v1389_v32, %v1461_v63 }
 0x270   : > { %v1466_v0 = vsel %vm479_vm8, inf, %v1410_v1 }
 0x271   : > { %498 = vmin.xlane.f32.xlu0 %v1466_v0 }
 0x275   : > { %506 = vmin.xlane.f32.xlu0 %v1305_v7 }
 0x2ee   : > { %v493_v56 = vpop.xlane.xlu1 %492 }
 0x2ef   : > { %v508_v3 = vmin.f32 %v493_v56, %v501_v2 }
 0x2f1   : > { %vm512_vm9 = vcmp.eq.f32.partialorder %v1441_v44, %v508_v3  ;;  %vm1145_vm10 = vcmp.eq.f32.partialorder %v508_v3, inf }
 0x2f2   : > { %v497_v5 = vpop.xlane.xlu1 %496  ;;  %v516_v6 = vsel %vm512_vm9, %v1389_v32, 1073741824  ;;  %v580_v16 = vsel %vm1145_vm10, 0, %v1306_v20  ;;  %vm467_vm9 = vcmp.eq.s32.totalorder %v1389_v32, 0  ;;  %vm648_vm10 = vcmp.eq.s32.totalorder %v1389_v32, 1 }
 0x2f3   : > { %v521_v8 = vshra.s32 %v516_v6, 16  ;;  %v585_v22 = vshra.s32 %v580_v16, 16  ;;  %v520_v40 = vand.u32 65535, %v516_v6  ;;  %v584_v52 = vand.u32 65535, %v580_v16 }
 0x2f5   : > { %v523_v9 = vcvt.s32.f32 %v521_v8  ;;  %v587_v26 = vcvt.s32.f32 %v585_v22  ;;  %v522_v42 = vcvt.s32.f32 %v520_v40  ;;  %v586_v58 = vcvt.s32.f32 %v584_v52 }
 0x2f6   : > { %v495_v10 = vpop.xlane.xlu0 %494  ;;  %v505_v11 = vpop.xlane.xlu1 %504 }
 0x2f7   : > { %v509_v1 = vmin.f32 %v495_v10, %v503_v4  ;;  %v510_v12 = vmin.f32 %v497_v5, %v505_v11  ;;  %524 = vmin.xlane.f32.xlu1 %v523_v9 }
 0x2f9   : > { %vm513_vm11 = vcmp.eq.f32.partialorder %v1457_v62, %v509_v1  ;;  %vm514_vm12 = vcmp.eq.f32.partialorder %v1449_v54, %v510_v12  ;;  %vm1147_vm13 = vcmp.eq.f32.partialorder %v510_v12, inf  ;;  %vm1146_vm14 = vcmp.eq.f32.partialorder %v509_v1, inf }
 0x2fa   : > { %v499_v13 = vpop.xlane.xlu0 %498  ;;  %v517_v14 = vsel %vm513_vm11, %v1389_v32, 1073741824  ;;  %v518_v15 = vsel %vm514_vm12, %v1389_v32, 1073741824  ;;  %v582_v24 = vsel %vm1147_vm13, 0, %v1306_v20  ;;  %v581_v29 = vsel %vm1146_vm14, 0, %v1306_v20 }
 0x2fb   : > { %v535_v17 = vshra.s32 %v517_v14, 16  ;;  %v549_v18 = vshra.s32 %v518_v15, 16  ;;  %v613_v27 = vshra.s32 %v582_v24, 16  ;;  %v599_v34 = vshra.s32 %v581_v29, 16 }
 0x2fc   : > { %v534_v45 = vand.u32 65535, %v517_v14  ;;  %v548_v46 = vand.u32 65535, %v518_v15  ;;  %v612_v61 = vand.u32 65535, %v582_v24  ;;  %v598_v6 = vand.u32 65535, %v581_v29 }
 0x2fd   : > { %v537_v19 = vcvt.s32.f32 %v535_v17  ;;  %v551_v21 = vcvt.s32.f32 %v549_v18  ;;  %v615_v33 = vcvt.s32.f32 %v613_v27  ;;  %v601_v36 = vcvt.s32.f32 %v599_v34 }
 0x2fe   : > { %v507_v23 = vpop.xlane.xlu0 %506  ;;  %v536_v50 = vcvt.s32.f32 %v534_v45  ;;  %v550_v51 = vcvt.s32.f32 %v548_v46  ;;  %v614_v5 = vcvt.s32.f32 %v612_v61  ;;  %v600_v11 = vcvt.s32.f32 %v598_v6 }
 0x2ff   : > { %v511_v25 = vmin.f32 %v499_v13, %v507_v23  ;;  %538 = vmin.xlane.f32.xlu0 %v537_v19  ;;  %552 = vmin.xlane.f32.xlu1 %v551_v21 }
 0x301   : > { %vm515_vm15 = vcmp.eq.f32.partialorder %v1466_v0, %v511_v25  ;;  %vm1148_vm0 = vcmp.eq.f32.partialorder %v511_v25, inf }
 0x302   : > { %v519_v28 = vsel %vm515_vm15, %v1389_v32, 1073741824  ;;  %v583_v35 = vsel %vm1148_vm0, 0, %v1306_v20 }
 0x303   : > { %588 = vmin.xlane.f32.xlu1 %v587_v26  ;;  %v563_v30 = vshra.s32 %v519_v28, 16  ;;  %v627_v37 = vshra.s32 %v583_v35, 16  ;;  %v562_v60 = vand.u32 65535, %v519_v28  ;;  %v626_v1 = vand.u32 65535, %v583_v35 }
 0x305   : > { %v565_v31 = vcvt.s32.f32 %v563_v30  ;;  %v629_v39 = vcvt.s32.f32 %v627_v37  ;;  %v564_v4 = vcvt.s32.f32 %v562_v60  ;;  %v628_v14 = vcvt.s32.f32 %v626_v1 }
 0x307   : > { %566 = vmin.xlane.f32.xlu0 %v565_v31  ;;  %616 = vmin.xlane.f32.xlu1 %v615_v33 }
 0x30b   : > { %602 = vmin.xlane.f32.xlu0 %v601_v36 }
 0x30f   : > { %630 = vmin.xlane.f32.xlu0 %v629_v39 }
 0x380   : > { %v525_v41 = vpop.xlane.xlu1 %524 }
 0x381   : > { %vm526_vm1 = vcmp.eq.f32.partialorder %v523_v9, %v525_v41  ;;  %v531_v18 = vcvt.f32.s32 %v525_v41  ;;  %v472_v41 = vsel %vm467_vm9, %v1435_v38, 0 }
 0x382   : > { %v527_v43 = vsel %vm526_vm1, %v522_v42, inf }
 0x383   : > { %528 = vmin.xlane.f32.xlu1 %v527_v43  ;;  %v532_v25 = vshll.u32 %v531_v18, 16 }
 0x388   : > { %v1482_v47 = vpop.xlane.xlu0 %538  ;;  %v553_v48 = vpop.xlane.xlu1 %552 }
 0x389   : > { %vm540_vm2 = vcmp.eq.f32.partialorder %v537_v19, %v1482_v47  ;;  %vm554_vm3 = vcmp.eq.f32.partialorder %v551_v21, %v553_v48  ;;  %v559_v22 = vcvt.f32.s32 %v553_v48 }
 0x38a   : > { %v541_v53 = vsel %vm540_vm2, %v536_v50, inf  ;;  %v555_v55 = vsel %vm554_vm3, %v550_v51, inf }
 0x38b   : > { %542 = vmin.xlane.f32.xlu0 %v541_v53  ;;  %556 = vmin.xlane.f32.xlu1 %v555_v55  ;;  %v560_v34 = vshll.u32 %v559_v22, 16 }
 0x38c   : > { %v589_v57 = vpop.xlane.xlu1 %588 }
 0x38d   : > { %vm590_vm4 = vcmp.eq.f32.partialorder %v587_v26, %v589_v57  ;;  %v595_v19 = vcvt.f32.s32 %v589_v57  ;;  %v474_v57 = vsel %vm467_vm9, %v1444_v49, 0  ;;  %v473_v49 = vsel %vm467_vm9, %v1452_v59, 0 }
 0x38e   : > { %v591_v2 = vsel %vm590_vm4, %v586_v58, inf  ;;  %v475_v59 = vsel %vm467_vm9, %v1461_v63, 0 }
 0x38f   : > { %592 = vmin.xlane.f32.xlu1 %v591_v2  ;;  %v596_v26 = vshll.u32 %v595_v19, 16 }
 0x390   : > { %v1485_v56 = vpop.xlane.xlu0 %566  ;;  %v617_v3 = vpop.xlane.xlu1 %616 }
 0x391   : > { %vm568_vm5 = vcmp.eq.f32.partialorder %v565_v31, %v1485_v56  ;;  %vm618_vm6 = vcmp.eq.f32.partialorder %v615_v33, %v617_v3  ;;  %v623_v27 = vcvt.f32.s32 %v617_v3  ;;  %v545_v33 = vcvt.f32.s32 %v1482_v47 }
 0x392   : > { %v569_v8 = vsel %vm568_vm5, %v564_v4, inf  ;;  %v619_v9 = vsel %vm618_vm6, %v614_v5, inf  ;;  %v573_v50 = vcvt.f32.s32 %v1485_v56 }
 0x393   : > { %570 = vmin.xlane.f32.xlu0 %v569_v8  ;;  %620 = vmin.xlane.f32.xlu1 %v619_v9  ;;  %v624_v37 = vshll.u32 %v623_v27, 16  ;;  %v546_v48 = vshll.u32 %v545_v33, 16 }
 0x394   : > { %v603_v10 = vpop.xlane.xlu0 %602  ;;  %v574_v4 = vshll.u32 %v573_v50, 16 }
 0x395   : > { %vm604_vm7 = vcmp.eq.f32.partialorder %v601_v36, %v603_v10 }
 0x396   : > { %v605_v12 = vsel %vm604_vm7, %v600_v11, inf }
 0x397   : > { %606 = vmin.xlane.f32.xlu0 %v605_v12  ;;  %681 = vmin.xlane.f32.xlu1 %v1305_v7 }
 0x398   : > { %v631_v13 = vpop.xlane.xlu0 %630 }
 0x399   : > { %vm632_vm8 = vcmp.eq.f32.partialorder %v629_v39, %v631_v13  ;;  %v609_v39 = vcvt.f32.s32 %v603_v10  ;;  %v637_v55 = vcvt.f32.s32 %v631_v13 }
 0x39a   : > { %v633_v15 = vsel %vm632_vm8, %v628_v14, inf }
 0x39b   : > { %634 = vmin.xlane.f32.xlu0 %v633_v15  ;;  %v610_v53 = vshll.u32 %v609_v39, 16  ;;  %v638_v5 = vshll.u32 %v637_v55, 16 }
 0x39f   : > { %683 = vmin.xlane.f32.xlu0 %v1305_v7 }
 0x40c   : > { %v529_v16 = vpop.xlane.xlu1 %528 }
 0x40d   : > { %v530_v21 = vcvt.f32.s32 %v529_v16 }
 0x40f   : > { %v533_v29 = vadd.s32 %v532_v25, %v530_v21 }
 0x414   : > { %v557_v17 = vpop.xlane.xlu1 %556  ;;  %v543_v23 = vpop.xlane.xlu0 %542 }
 0x415   : > { %v558_v30 = vcvt.f32.s32 %v557_v17  ;;  %v544_v42 = vcvt.f32.s32 %v543_v23 }
 0x417   : > { %v561_v45 = vadd.s32 %v560_v34, %v558_v30  ;;  %v547_v58 = vadd.s32 %v546_v48, %v544_v42 }
 0x418   : > { %v593_v24 = vpop.xlane.xlu1 %592 }
 0x419   : > { %v594_v28 = vcvt.f32.s32 %v593_v24 }
 0x41b   : > { %v597_v31 = vadd.s32 %v596_v26, %v594_v28 }
 0x41c   : > { %v571_v35 = vpop.xlane.xlu0 %570  ;;  %v621_v36 = vpop.xlane.xlu1 %620 }
 0x41d   : > { %vm640_vm11 = vcmp.lt.s32.totalorder %v533_v29, %v597_v31  ;;  %v622_v40 = vcvt.f32.s32 %v621_v36  ;;  %v572_v61 = vcvt.f32.s32 %v571_v35 }
 0x41e   : > { %v641_v43 = vsel %vm640_vm11, %v533_v29, %v597_v31 }
 0x41f   : > { %v625_v46 = vadd.s32 %v624_v37, %v622_v40  ;;  %vm657_vm12 = vcmp.eq.s32.totalorder %v1389_v32, %v641_v43  ;;  %v1499_v47 = vsel %vm648_vm10, %v641_v43, %v472_v41  ;;  %v575_v9 = vadd.s32 %v574_v4, %v572_v61 }
 0x420   : > { %v607_v51 = vpop.xlane.xlu0 %606  ;;  %v1503_v52 = vsel %vm657_vm12, inf, %v1441_v44 }
 0x421   : > { %vm644_vm13 = vcmp.lt.s32.totalorder %v561_v45, %v625_v46  ;;  %v608_v38 = vcvt.f32.s32 %v607_v51  ;;  %673 = vmin.xlane.f32.xlu1 %v1503_v52 }
 0x422   : > { %v645_v60 = vsel %vm644_vm13, %v561_v45, %v625_v46 }
 0x423   : > { %v611_v2 = vadd.s32 %v610_v53, %v608_v38  ;;  %vm659_vm14 = vcmp.eq.s32.totalorder %v1389_v32, %v645_v60  ;;  %v1512_v44 = vsel %vm648_vm10, %v645_v60, %v474_v57 }
 0x424   : > { %v635_v56 = vpop.xlane.xlu0 %634  ;;  %v1515_v3 = vsel %vm659_vm14, inf, %v1449_v54 }
 0x425   : > { %vm642_vm15 = vcmp.lt.s32.totalorder %v547_v58, %v611_v2  ;;  %v636_v6 = vcvt.f32.s32 %v635_v56  ;;  %677 = vmin.xlane.f32.xlu1 %v1515_v3 }
 0x426   : > { %v643_v8 = vsel %vm642_vm15, %v547_v58, %v611_v2 }
 0x427   : > { %v639_v10 = vadd.s32 %v638_v5, %v636_v6  ;;  %vm658_vm0 = vcmp.eq.s32.totalorder %v1389_v32, %v643_v8  ;;  %v1524_v11 = vsel %vm648_vm10, %v643_v8, %v473_v49 }
 0x428   : > { %v1527_v54 = vsel %vm658_vm0, inf, %v1457_v62  ;;  %v682_v62 = vpop.xlane.xlu1 %681  ;;  %v684_v16 = vpop.xlane.xlu0 %683 }
 0x429   : > { %vm646_vm1 = vcmp.lt.s32.totalorder %v575_v9, %v639_v10  ;;  %675 = vmin.xlane.f32.xlu0 %v1527_v54  ;;  %685 = vmin.xlane.f32.xlu1 %v1305_v7 }
 0x42a   : > { %v647_v1 = vsel %vm646_vm1, %v575_v9, %v639_v10 }
 0x42b   : > { %vm660_vm2 = vcmp.eq.s32.totalorder %v1389_v32, %v647_v1  ;;  %v1537_v12 = vsel %vm648_vm10, %v647_v1, %v475_v59 }
 0x42c   : > { %v1540_v13 = vsel %vm660_vm2, inf, %v1466_v0 }
 0x42d   : > { %679 = vmin.xlane.f32.xlu0 %v1540_v13 }
 0x431   : > { %687 = vmin.xlane.f32.xlu0 %v1305_v7 }
 0x4aa   : > { %v674_v14 = vpop.xlane.xlu1 %673 }
 0x4ab   : > { %v689_v15 = vmin.f32 %v674_v14, %v682_v62 }
 0x4ad   : > { %vm693_vm3 = vcmp.eq.f32.partialorder %v1503_v52, %v689_v15  ;;  %vm1149_vm4 = vcmp.eq.f32.partialorder %v689_v15, inf }
 0x4ae   : > { %v678_v63 = vpop.xlane.xlu1 %677  ;;  %v697_v17 = vsel %vm693_vm3, %v1389_v32, 1073741824  ;;  %v761_v27 = vsel %vm1149_vm4, 0, %v1306_v20  ;;  %vm829_vm3 = vcmp.eq.s32.totalorder %v1389_v32, 2 }
 0x4af   : > { %v702_v18 = vshra.s32 %v697_v17, 16  ;;  %v766_v33 = vshra.s32 %v761_v27, 16  ;;  %v701_v55 = vand.u32 65535, %v697_v17  ;;  %v765_v6 = vand.u32 65535, %v761_v27 }
 0x4b1   : > { %v704_v19 = vcvt.s32.f32 %v702_v18  ;;  %v768_v37 = vcvt.s32.f32 %v766_v33  ;;  %v703_v57 = vcvt.s32.f32 %v701_v55  ;;  %v767_v10 = vcvt.s32.f32 %v765_v6 }
 0x4b2   : > { %v676_v21 = vpop.xlane.xlu0 %675  ;;  %v686_v22 = vpop.xlane.xlu1 %685 }
 0x4b3   : > { %v690_v0 = vmin.f32 %v676_v21, %v684_v16  ;;  %v691_v23 = vmin.f32 %v678_v63, %v686_v22  ;;  %705 = vmin.xlane.f32.xlu1 %v704_v19 }
 0x4b5   : > { %vm694_vm5 = vcmp.eq.f32.partialorder %v1527_v54, %v690_v0  ;;  %vm695_vm6 = vcmp.eq.f32.partialorder %v1515_v3, %v691_v23  ;;  %vm1151_vm7 = vcmp.eq.f32.partialorder %v691_v23, inf  ;;  %vm1150_vm8 = vcmp.eq.f32.partialorder %v690_v0, inf }
 0x4b6   : > { %v680_v24 = vpop.xlane.xlu0 %679  ;;  %v698_v25 = vsel %vm694_vm5, %v1389_v32, 1073741824  ;;  %v699_v26 = vsel %vm695_vm6, %v1389_v32, 1073741824  ;;  %v763_v35 = vsel %vm1151_vm7, 0, %v1306_v20  ;;  %v762_v41 = vsel %vm1150_vm8, 0, %v1306_v20 }
 0x4b7   : > { %v716_v28 = vshra.s32 %v698_v25, 16  ;;  %v730_v29 = vshra.s32 %v699_v26, 16  ;;  %v794_v39 = vshra.s32 %v763_v35, 16  ;;  %v780_v46 = vshra.s32 %v762_v41, 16 }
 0x4b8   : > { %v715_v60 = vand.u32 65535, %v698_v25  ;;  %v729_v61 = vand.u32 65535, %v699_v26  ;;  %v793_v1 = vand.u32 65535, %v763_v35  ;;  %v779_v17 = vand.u32 65535, %v762_v41 }
 0x4b9   : > { %v718_v30 = vcvt.s32.f32 %v716_v28  ;;  %v732_v31 = vcvt.s32.f32 %v730_v29  ;;  %v796_v45 = vcvt.s32.f32 %v794_v39  ;;  %v782_v50 = vcvt.s32.f32 %v780_v46 }
 0x4ba   : > { %v688_v34 = vpop.xlane.xlu0 %687  ;;  %v717_v4 = vcvt.s32.f32 %v715_v60  ;;  %v731_v5 = vcvt.s32.f32 %v729_v61  ;;  %v795_v63 = vcvt.s32.f32 %v793_v1  ;;  %v781_v22 = vcvt.s32.f32 %v779_v17 }
 0x4bb   : > { %v692_v36 = vmin.f32 %v680_v24, %v688_v34  ;;  %719 = vmin.xlane.f32.xlu0 %v718_v30  ;;  %733 = vmin.xlane.f32.xlu1 %v732_v31 }
 0x4bd   : > { %vm696_vm9 = vcmp.eq.f32.partialorder %v1540_v13, %v692_v36  ;;  %vm1152_vm10 = vcmp.eq.f32.partialorder %v692_v36, inf }
 0x4be   : > { %v700_v40 = vsel %vm696_vm9, %v1389_v32, 1073741824  ;;  %v764_v48 = vsel %vm1152_vm10, 0, %v1306_v20 }
 0x4bf   : > { %769 = vmin.xlane.f32.xlu1 %v768_v37  ;;  %v744_v42 = vshra.s32 %v700_v40, 16  ;;  %v808_v51 = vshra.s32 %v764_v48, 16  ;;  %v743_v59 = vand.u32 65535, %v700_v40  ;;  %v807_v0 = vand.u32 65535, %v764_v48 }
 0x4c1   : > { %v746_v43 = vcvt.s32.f32 %v744_v42  ;;  %v810_v53 = vcvt.s32.f32 %v808_v51  ;;  %v745_v16 = vcvt.s32.f32 %v743_v59  ;;  %v809_v25 = vcvt.s32.f32 %v807_v0 }
 0x4c3   : > { %747 = vmin.xlane.f32.xlu0 %v746_v43  ;;  %797 = vmin.xlane.f32.xlu1 %v796_v45 }
 0x4c7   : > { %783 = vmin.xlane.f32.xlu0 %v782_v50 }
 0x4cb   : > { %811 = vmin.xlane.f32.xlu0 %v810_v53 }
 0x53c   : > { %v706_v38 = vpop.xlane.xlu1 %705 }
 0x53d   : > { %vm707_vm11 = vcmp.eq.f32.partialorder %v704_v19, %v706_v38  ;;  %v712_v29 = vcvt.f32.s32 %v706_v38 }
 0x53e   : > { %v708_v58 = vsel %vm707_vm11, %v703_v57, inf }
 0x53f   : > { %709 = vmin.xlane.f32.xlu1 %v708_v58  ;;  %v713_v36 = vshll.u32 %v712_v29, 16 }
 0x544   : > { %v1556_v2 = vpop.xlane.xlu0 %719  ;;  %v734_v56 = vpop.xlane.xlu1 %733 }
 0x545   : > { %vm721_vm12 = vcmp.eq.f32.partialorder %v718_v30, %v1556_v2  ;;  %vm735_vm13 = vcmp.eq.f32.partialorder %v732_v31, %v734_v56  ;;  %v740_v33 = vcvt.f32.s32 %v734_v56 }
 0x546   : > { %v722_v49 = vsel %vm721_vm12, %v717_v4, inf  ;;  %v736_v8 = vsel %vm735_vm13, %v731_v5, inf }
 0x547   : > { %723 = vmin.xlane.f32.xlu0 %v722_v49  ;;  %737 = vmin.xlane.f32.xlu1 %v736_v8  ;;  %v741_v46 = vshll.u32 %v740_v33, 16 }
 0x548   : > { %v770_v9 = vpop.xlane.xlu1 %769 }
 0x549   : > { %vm771_vm14 = vcmp.eq.f32.partialorder %v768_v37, %v770_v9  ;;  %v776_v30 = vcvt.f32.s32 %v770_v9 }
 0x54a   : > { %v772_v62 = vsel %vm771_vm14, %v767_v10, inf }
 0x54b   : > { %773 = vmin.xlane.f32.xlu1 %v772_v62  ;;  %v777_v37 = vshll.u32 %v776_v30, 16 }
 0x54c   : > { %v1559_v14 = vpop.xlane.xlu0 %747  ;;  %v798_v15 = vpop.xlane.xlu1 %797 }
 0x54d   : > { %vm749_vm15 = vcmp.eq.f32.partialorder %v746_v43, %v1559_v14  ;;  %vm799_vm0 = vcmp.eq.f32.partialorder %v796_v45, %v798_v15  ;;  %v804_v39 = vcvt.f32.s32 %v798_v15  ;;  %v726_v45 = vcvt.f32.s32 %v1556_v2 }
 0x54e   : > { %v750_v18 = vsel %vm749_vm15, %v745_v16, inf  ;;  %v800_v19 = vsel %vm799_vm0, %v795_v63, inf  ;;  %v754_v56 = vcvt.f32.s32 %v1559_v14 }
 0x54f   : > { %751 = vmin.xlane.f32.xlu0 %v750_v18  ;;  %801 = vmin.xlane.f32.xlu1 %v800_v19  ;;  %v805_v51 = vshll.u32 %v804_v39, 16  ;;  %v727_v2 = vshll.u32 %v726_v45, 16 }
 0x550   : > { %v784_v21 = vpop.xlane.xlu0 %783 }
 0x551   : > { %vm785_vm1 = vcmp.eq.f32.partialorder %v782_v50, %v784_v21 }
 0x552   : > { %v786_v23 = vsel %vm785_vm1, %v781_v22, inf }
 0x553   : > { %787 = vmin.xlane.f32.xlu0 %v786_v23  ;;  %862 = vmin.xlane.f32.xlu1 %v1305_v7 }
 0x554   : > { %v812_v24 = vpop.xlane.xlu0 %811 }
 0x555   : > { %vm813_vm2 = vcmp.eq.f32.partialorder %v810_v53, %v812_v24  ;;  %v790_v53 = vcvt.f32.s32 %v784_v21  ;;  %v818_v49 = vcvt.f32.s32 %v812_v24 }
 0x556   : > { %v814_v26 = vsel %vm813_vm2, %v809_v25, inf }
 0x557   : > { %815 = vmin.xlane.f32.xlu0 %v814_v26  ;;  %v791_v6 = vshll.u32 %v790_v53, 16  ;;  %v819_v15 = vshll.u32 %v818_v49, 16 }
 0x55b   : > { %864 = vmin.xlane.f32.xlu0 %v1305_v7 }
 0x5c8   : > { %v710_v27 = vpop.xlane.xlu1 %709 }
 0x5c9   : > { %v711_v31 = vcvt.f32.s32 %v710_v27 }
 0x5cb   : > { %v714_v41 = vadd.s32 %v713_v36, %v711_v31 }
 0x5d0   : > { %v738_v28 = vpop.xlane.xlu1 %737  ;;  %v724_v34 = vpop.xlane.xlu0 %723 }
 0x5d1   : > { %v739_v42 = vcvt.f32.s32 %v738_v28  ;;  %v725_v38 = vcvt.f32.s32 %v724_v34 }
 0x5d3   : > { %v742_v58 = vadd.s32 %v741_v46, %v739_v42  ;;  %v728_v9 = vadd.s32 %v727_v2, %v725_v38 }
 0x5d4   : > { %v774_v35 = vpop.xlane.xlu1 %773 }
 0x5d5   : > { %v775_v40 = vcvt.f32.s32 %v774_v35 }
 0x5d7   : > { %v778_v43 = vadd.s32 %v777_v37, %v775_v40 }
 0x5d8   : > { %v752_v48 = vpop.xlane.xlu0 %751  ;;  %v802_v50 = vpop.xlane.xlu1 %801 }
 0x5d9   : > { %vm821_vm4 = vcmp.lt.s32.totalorder %v714_v41, %v778_v43  ;;  %v803_v55 = vcvt.f32.s32 %v802_v50  ;;  %v753_v59 = vcvt.f32.s32 %v752_v48 }
 0x5da   : > { %v822_v57 = vsel %vm821_vm4, %v714_v41, %v778_v43 }
 0x5db   : > { %v806_v60 = vadd.s32 %v805_v51, %v803_v55  ;;  %vm838_vm5 = vcmp.eq.s32.totalorder %v1389_v32, %v822_v57  ;;  %v1570_v61 = vsel %vm829_vm3, %v822_v57, %v1499_v47 }
 0x5dc   : > { %v788_v4 = vpop.xlane.xlu0 %787  ;;  %v842_v5 = vsel %vm838_vm5, inf, %v1503_v52  ;;  %v755_v52 = vshll.u32 %v754_v56, 16 }
 0x5dd   : > { %vm825_vm6 = vcmp.lt.s32.totalorder %v742_v58, %v806_v60  ;;  %v789_v8 = vcvt.f32.s32 %v788_v4  ;;  %854 = vmin.xlane.f32.xlu1 %v842_v5 }
 0x5de   : > { %v826_v10 = vsel %vm825_vm6, %v742_v58, %v806_v60  ;;  %v756_v17 = vadd.s32 %v755_v52, %v753_v59 }
 0x5df   : > { %v792_v1 = vadd.s32 %v791_v6, %v789_v8  ;;  %vm840_vm7 = vcmp.eq.s32.totalorder %v1389_v32, %v826_v10  ;;  %v1578_v47 = vsel %vm829_vm3, %v826_v10, %v1512_v44 }
 0x5e0   : > { %v816_v62 = vpop.xlane.xlu0 %815  ;;  %v844_v14 = vsel %vm840_vm7, inf, %v1515_v3 }
 0x5e1   : > { %vm823_vm8 = vcmp.lt.s32.totalorder %v728_v9, %v792_v1  ;;  %v817_v16 = vcvt.f32.s32 %v816_v62  ;;  %858 = vmin.xlane.f32.xlu1 %v844_v14 }
 0x5e2   : > { %v824_v63 = vsel %vm823_vm8, %v728_v9, %v792_v1 }
 0x5e3   : > { %v820_v18 = vadd.s32 %v819_v15, %v817_v16  ;;  %vm839_vm9 = vcmp.eq.s32.totalorder %v1389_v32, %v824_v63  ;;  %v1585_v19 = vsel %vm829_vm3, %v824_v63, %v1524_v11  ;;  %v863_v11 = vpop.xlane.xlu1 %862 }
 0x5e4   : > { %v843_v44 = vsel %vm839_vm9, inf, %v1527_v54  ;;  %v865_v23 = vpop.xlane.xlu0 %864 }
 0x5e5   : > { %vm827_vm10 = vcmp.lt.s32.totalorder %v756_v17, %v820_v18  ;;  %856 = vmin.xlane.f32.xlu0 %v843_v44  ;;  %866 = vmin.xlane.f32.xlu1 %v1305_v7 }
 0x5e6   : > { %v828_v3 = vsel %vm827_vm10, %v756_v17, %v820_v18 }
 0x5e7   : > { %vm841_vm11 = vcmp.eq.s32.totalorder %v1389_v32, %v828_v3  ;;  %v1593_v21 = vsel %vm829_vm3, %v828_v3, %v1537_v12 }
 0x5e8   : > { %v845_v22 = vsel %vm841_vm11, inf, %v1540_v13 }
 0x5e9   : > { %860 = vmin.xlane.f32.xlu0 %v845_v22 }
 0x5ed   : > { %868 = vmin.xlane.f32.xlu0 %v1305_v7 }
 0x666   : > { %v855_v0 = vpop.xlane.xlu1 %854 }
 0x667   : > { %v870_v54 = vmin.f32 %v855_v0, %v863_v11 }
 0x669   : > { %vm874_vm12 = vcmp.eq.f32.partialorder %v842_v5, %v870_v54  ;;  %vm1153_vm13 = vcmp.eq.f32.partialorder %v870_v54, inf }
 0x66a   : > { %v859_v24 = vpop.xlane.xlu1 %858  ;;  %v878_v25 = vsel %vm874_vm12, %v1389_v32, 1073741824  ;;  %v942_v33 = vsel %vm1153_vm13, 0, %v1306_v20  ;;  %vm1010_vm12 = vcmp.eq.s32.totalorder %v1389_v32, 3 }
 0x66b   : > { %v883_v26 = vshra.s32 %v878_v25, 16  ;;  %v947_v39 = vshra.s32 %v942_v33, 16  ;;  %v882_v2 = vand.u32 65535, %v878_v25  ;;  %v946_v8 = vand.u32 65535, %v942_v33 }
 0x66d   : > { %v885_v27 = vcvt.s32.f32 %v883_v26  ;;  %v949_v43 = vcvt.s32.f32 %v947_v39  ;;  %v884_v4 = vcvt.s32.f32 %v882_v2  ;;  %v948_v15 = vcvt.s32.f32 %v946_v8 }
 0x66e   : > { %v857_v28 = vpop.xlane.xlu0 %856  ;;  %v867_v29 = vpop.xlane.xlu1 %866 }
 0x66f   : > { %v871_v12 = vmin.f32 %v857_v28, %v865_v23  ;;  %v872_v30 = vmin.f32 %v859_v24, %v867_v29  ;;  %886 = vmin.xlane.f32.xlu1 %v885_v27 }
 0x671   : > { %vm875_vm14 = vcmp.eq.f32.partialorder %v843_v44, %v871_v12  ;;  %vm876_vm15 = vcmp.eq.f32.partialorder %v844_v14, %v872_v30  ;;  %vm1155_vm0 = vcmp.eq.f32.partialorder %v872_v30, inf  ;;  %vm1154_vm1 = vcmp.eq.f32.partialorder %v871_v12, inf }
 0x672   : > { %v861_v13 = vpop.xlane.xlu0 %860  ;;  %v879_v7 = vsel %vm875_vm14, %v1389_v32, 1073741824  ;;  %v880_v31 = vsel %vm876_vm15, %v1389_v32, 1073741824  ;;  %v944_v40 = vsel %vm1155_vm0, 0, %v1306_v20  ;;  %v943_v48 = vsel %vm1154_vm1, 0, %v1306_v20 }
 0x673   : > { %v897_v34 = vshra.s32 %v879_v7, 16  ;;  %v911_v35 = vshra.s32 %v880_v31, 16  ;;  %v975_v45 = vshra.s32 %v944_v40, 16  ;;  %v961_v55 = vshra.s32 %v943_v48, 16 }
 0x674   : > { %v896_v6 = vand.u32 65535, %v879_v7  ;;  %v910_v49 = vand.u32 65535, %v880_v31  ;;  %v974_v16 = vand.u32 65535, %v944_v40  ;;  %v960_v17 = vand.u32 65535, %v943_v48 }
 0x675   : > { %v899_v36 = vcvt.s32.f32 %v897_v34  ;;  %v913_v37 = vcvt.s32.f32 %v911_v35  ;;  %v977_v53 = vcvt.s32.f32 %v975_v45  ;;  %v963_v57 = vcvt.s32.f32 %v961_v55 }
 0x676   : > { %v869_v41 = vpop.xlane.xlu0 %868  ;;  %v912_v59 = vcvt.s32.f32 %v910_v49  ;;  %v962_v23 = vcvt.s32.f32 %v960_v17 }
 0x677   : > { %v873_v42 = vmin.f32 %v861_v13, %v869_v41  ;;  %900 = vmin.xlane.f32.xlu0 %v899_v36  ;;  %914 = vmin.xlane.f32.xlu1 %v913_v37 }
 0x679   : > { %vm877_vm2 = vcmp.eq.f32.partialorder %v845_v22, %v873_v42  ;;  %vm1156_vm3 = vcmp.eq.f32.partialorder %v873_v42, inf  ;;  %v976_v22 = vcvt.s32.f32 %v974_v16 }
 0x67a   : > { %v881_v46 = vsel %vm877_vm2, %v1389_v32, 1073741824  ;;  %v945_v38 = vsel %vm1156_vm3, 0, %v1306_v20  ;;  %v898_v20 = vcvt.s32.f32 %v896_v6 }
 0x67b   : > { %950 = vmin.xlane.f32.xlu1 %v949_v43  ;;  %v925_v50 = vshra.s32 %v881_v46, 16  ;;  %v989_v58 = vshra.s32 %v945_v38, 16  ;;  %v924_v14 = vand.u32 65535, %v881_v46  ;;  %v988_v24 = vand.u32 65535, %v945_v38 }
 0x67d   : > { %v927_v51 = vcvt.s32.f32 %v925_v50  ;;  %v991_v60 = vcvt.s32.f32 %v989_v58  ;;  %v926_v3 = vcvt.s32.f32 %v924_v14 }
 0x67f   : > { %928 = vmin.xlane.f32.xlu0 %v927_v51  ;;  %978 = vmin.xlane.f32.xlu1 %v977_v53 }
 0x683   : > { %964 = vmin.xlane.f32.xlu0 %v963_v57 }
 0x687   : > { %992 = vmin.xlane.f32.xlu0 %v991_v60 }
 0x6f8   : > { %v887_v56 = vpop.xlane.xlu1 %886 }
 0x6f9   : > { %vm888_vm4 = vcmp.eq.f32.partialorder %v885_v27, %v887_v56  ;;  %v990_v27 = vcvt.s32.f32 %v988_v24  ;;  %v893_v30 = vcvt.f32.s32 %v887_v56 }
 0x6fa   : > { %v889_v5 = vsel %vm888_vm4, %v884_v4, inf }
 0x6fb   : > { %890 = vmin.xlane.f32.xlu1 %v889_v5  ;;  %v894_v35 = vshll.u32 %v893_v30, 16 }
 0x700   : > { %v1605_v9 = vpop.xlane.xlu0 %900  ;;  %v915_v10 = vpop.xlane.xlu1 %914 }
 0x701   : > { %vm902_vm5 = vcmp.eq.f32.partialorder %v899_v36, %v1605_v9  ;;  %vm916_vm6 = vcmp.eq.f32.partialorder %v913_v37, %v915_v10  ;;  %v921_v31 = vcvt.f32.s32 %v915_v10 }
 0x702   : > { %v903_v1 = vsel %vm902_vm5, %v898_v20, inf  ;;  %v917_v62 = vsel %vm916_vm6, %v912_v59, inf }
 0x703   : > { %904 = vmin.xlane.f32.xlu0 %v903_v1  ;;  %918 = vmin.xlane.f32.xlu1 %v917_v62  ;;  %v922_v45 = vshll.u32 %v921_v31, 16 }
 0x704   : > { %v951_v52 = vpop.xlane.xlu1 %950 }
 0x705   : > { %vm952_vm7 = vcmp.eq.f32.partialorder %v949_v43, %v951_v52  ;;  %v957_v13 = vcvt.f32.s32 %v951_v52  ;;  %v907_v43 = vcvt.f32.s32 %v1605_v9 }
 0x706   : > { %v953_v63 = vsel %vm952_vm7, %v948_v15, inf }
 0x707   : > { %954 = vmin.xlane.f32.xlu1 %v953_v63  ;;  %v958_v36 = vshll.u32 %v957_v13, 16  ;;  %v908_v2 = vshll.u32 %v907_v43, 16 }
 0x708   : > { %v1608_v18 = vpop.xlane.xlu0 %928  ;;  %v979_v44 = vpop.xlane.xlu1 %978 }
 0x709   : > { %vm930_vm8 = vcmp.eq.f32.partialorder %v927_v51, %v1608_v18  ;;  %vm980_vm9 = vcmp.eq.f32.partialorder %v977_v53, %v979_v44  ;;  %v985_v37 = vcvt.f32.s32 %v979_v44  ;;  %v935_v56 = vcvt.f32.s32 %v1608_v18 }
 0x70a   : > { %v931_v11 = vsel %vm930_vm8, %v926_v3, inf  ;;  %v981_v0 = vsel %vm980_vm9, %v976_v22, inf }
 0x70b   : > { %932 = vmin.xlane.f32.xlu0 %v931_v11  ;;  %982 = vmin.xlane.f32.xlu1 %v981_v0  ;;  %v986_v50 = vshll.u32 %v985_v37, 16  ;;  %v936_v1 = vshll.u32 %v935_v56, 16 }
 0x70c   : > { %v965_v54 = vpop.xlane.xlu0 %964 }
 0x70d   : > { %vm966_vm10 = vcmp.eq.f32.partialorder %v963_v57, %v965_v54  ;;  %v971_v51 = vcvt.f32.s32 %v965_v54 }
 0x70e   : > { %v967_v25 = vsel %vm966_vm10, %v962_v23, inf }
 0x70f   : > { %968 = vmin.xlane.f32.xlu0 %v967_v25  ;;  %v972_v5 = vshll.u32 %v971_v51, 16 }
 0x710   : > { %v993_v26 = vpop.xlane.xlu0 %992 }
 0x711   : > { %vm994_vm11 = vcmp.eq.f32.partialorder %v991_v60, %v993_v26  ;;  %v999_v6 = vcvt.f32.s32 %v993_v26 }
 0x712   : > { %v995_v28 = vsel %vm994_vm11, %v990_v27, inf }
 0x713   : > { %996 = vmin.xlane.f32.xlu0 %v995_v28  ;;  %v1000_v62 = vshll.u32 %v999_v6, 16 }
 0x784   : > { %v891_v29 = vpop.xlane.xlu1 %890 }
 0x785   : > { %v892_v7 = vcvt.f32.s32 %v891_v29 }
 0x787   : > { %v895_v40 = vadd.s32 %v894_v35, %v892_v7 }
 0x78c   : > { %v919_v12 = vpop.xlane.xlu1 %918  ;;  %v905_v33 = vpop.xlane.xlu0 %904 }
 0x78d   : > { %v920_v41 = vcvt.f32.s32 %v919_v12  ;;  %v906_v38 = vcvt.f32.s32 %v905_v33 }
 0x78f   : > { %v923_v57 = vadd.s32 %v922_v45, %v920_v41  ;;  %v909_v9 = vadd.s32 %v908_v2, %v906_v38 }
 0x790   : > { %v955_v34 = vpop.xlane.xlu1 %954 }
 0x791   : > { %v956_v39 = vcvt.f32.s32 %v955_v34 }
 0x793   : > { %v959_v42 = vadd.s32 %v958_v36, %v956_v39 }
 0x794   : > { %v933_v46 = vpop.xlane.xlu0 %932  ;;  %v983_v48 = vpop.xlane.xlu1 %982 }
 0x795   : > { %vm1002_vm13 = vcmp.lt.s32.totalorder %v895_v40, %v959_v42  ;;  %v984_v53 = vcvt.f32.s32 %v983_v48  ;;  %v934_v10 = vcvt.f32.s32 %v933_v46 }
 0x796   : > { %v1003_v55 = vsel %vm1002_vm13, %v895_v40, %v959_v42 }
 0x797   : > { %v1015_v58 = vsel %vm1010_vm12, %v1003_v55, %v1570_v61  ;;  %v987_v60 = vadd.s32 %v986_v50, %v984_v53  ;;  %v937_v15 = vadd.s32 %v936_v1, %v934_v10 }
 0x798   : > { %1023 = vst [vmem:[%s162_s4] sm:$0xff] %v1015_v58  ;;  %v969_v4 = vpop.xlane.xlu0 %968 }
 0x799   : > { %vm1006_vm14 = vcmp.lt.s32.totalorder %v923_v57, %v987_v60  ;;  %v970_v49 = vcvt.f32.s32 %v969_v4 }
 0x79a   : > { %v1007_v8 = vsel %vm1006_vm14, %v923_v57, %v987_v60 }
 0x79b   : > { %v1017_v20 = vsel %vm1010_vm12, %v1007_v8, %v1578_v47  ;;  %v973_v61 = vadd.s32 %v972_v5, %v970_v49 }
 0x79c   : > { %1025 = vst [vmem:[%s162_s4 + $0x10] sm:$0xff] %v1017_v20  ;;  %v997_v59 = vpop.xlane.xlu0 %996 }
 0x79d   : > { %vm1004_vm15 = vcmp.lt.s32.totalorder %v909_v9, %v973_v61  ;;  %v998_v14 = vcvt.f32.s32 %v997_v59 }
 0x79e   : > { %v1005_v52 = vsel %vm1004_vm15, %v909_v9, %v973_v61 }
 0x79f   : > { %v1016_v16 = vsel %vm1010_vm12, %v1005_v52, %v1585_v19  ;;  %v1001_v63 = vadd.s32 %v1000_v62, %v998_v14 }
 0x7a0   : > { %1024 = vst [vmem:[%s162_s4 + $0x8] sm:$0xff] %v1016_v16 }
 0x7a1   : > { %vm1008_vm0 = vcmp.lt.s32.totalorder %v937_v15, %v1001_v63 }
 0x7a2   : > { %v1009_v47 = vsel %vm1008_vm0, %v937_v15, %v1001_v63 }
 0x7a3   : > { %v1018_v17 = vsel %vm1010_vm12, %v1009_v47, %v1593_v21 }
 0x7a4   : > { %1026 = vst [vmem:[%s162_s4 + $0x18] sm:$0xff] %v1018_v17 }
 0x7a5   : > { %1237 = shalt.err (!%p1234_p5)
}
 0x7a6   : > { %s1238_s24 = scalar_lea.hbm %s1630_s15, 512  ;;  %s1242_s27 = scalar_lea.hbm %s1686_s2, 1024 }
 0x7a7   : > { %p1239_p6 = scmp.ne.s32.totalorder %s1630_s15, %s1238_s24  ;;  %p1243_p10 = scmp.lt.s32.totalorder %s1630_s15, %s1686_s2 }
 0x7a8   : > { %p1244_p11 = scmp.lt.s32.totalorder %s1242_s27, %s1238_s24 }
 0x7a9   : > { %p1240_p7 = pnand %p1239_p6, %p1365_p4 }
 0x7aa   : > { %p1245_p12 = por %p1244_p11, %p1243_p10 }
 0x7ab   : > { %p1241_p9 = pneg %p1240_p7 }
 0x7ad   : > { %p1246_p13 = pnand %p1245_p12, %p1241_p9 }
 0x7af   : > { %1249 = shalt.err (!%p1246_p13)
}
 0x7b0   : > { %s1308_s30 = smov 128   ;;  %s1309_s3 = smov 8  }
 0x7b1   : > { %1157 = dma.vmem_to_hbm [thread:$0]  (%p1365_p4), %s1632_s6, 512, %s1630_s15, %s1639_s12, %s1308_s30, %s1308_s30, %s1309_s3  }
 0x7b2 PF: > { %p1163_p0 = scmp.ge.s32.totalorder %s1300_s14, 2  ;;  %s1056_s4 = sand.u32 1, %s1280_s9  }
 0x7b3   : > { %s1057_s5 = scalar_lea.sflag [#allocation4], %s1056_s4 }
 0x7b4   : > { %p1160_p1 = pnand %p1163_p0, %p1372_p8 }
 0x7b6   : > { %p1161_p2 = pneg %p1160_p1 }
 0x7b8   : > { %1275 = dma.done.wait (%p1161_p2), %s1057_s5, 512  }
 0x7b9   : > { %1277 = vsyncadd (%p1161_p2), %s1057_s5, 4294966784  ;;  %s15_s14 = sadd.s32 1, %s1300_s14   ;;  %s1689_s9 = smov %s1284_s10 }
 0x7ba   : > { %p12_p3 = scmp.ge.s32.totalorder %s15_s14, 4   ;;  %s1690_s10 = smov %s1288_s11 }
 0x7bb   : > { %s1691_s11 = smov %s1378_s22  ;;  %s1692_s12 = smov %s1296_s13 }
 0x7bc   : > { %s1693_s13 = smov %s1695_s17  ;;  %14 = sbr.rel (!%p12_p3) target bundleno = 4 (0x4), region = 70 }
 0x7c1   :  { %1062 = vsyncpa [#allocation4], 1 }
 0x7c2   :  { %1064 = vsyncpa [#allocation4 + $0x1], 1 }

</bundles_post_ra>
